<compile_context>
chip_gen: v5e
topology: v5e:2x2
jax: 0.10.0
libtpu: 0.0.40
codegen_flags: <defaults>
</compile_context>

<pallas_src>
import functools
import warnings

import numpy as np
import jax
import jax.numpy as jnp
from jax.experimental import pallas as pl
from jax.experimental.pallas import tpu as pltpu

_LANES = 128


def _lpccheck_kernel(a_ref, out_ref, flag_ref, kc_ref, f_ref, r_ref, *, bound, M):
    # a_ref : (M+1, TBS, 128) — row 0 = gain K, rows 1..M = a_1..a_M
    # f_ref : current LPC body a_1..a_m        (VMEM scratch, (M, TBS, 128) f32)
    # r_ref : reverse of the current LPC body  (VMEM scratch, (M, TBS, 128) f32)
    # kc_ref: clipped reflection coefficients  (VMEM scratch, (M, TBS, 128) f32)
    out_ref[0] = a_ref[0]                         # gain passes through unchanged

    for i in range(M):
        row = a_ref[i + 1].astype(jnp.float32)    # (TBS, 128)
        f_ref[i] = row
        r_ref[M - 1 - i] = row

    flag = jnp.zeros(flag_ref.shape, jnp.float32)

    # ---- step-down: LPC -> PARCOR (clipped k written directly to scratch) ----
    # TODO(synk): for very large LPC orders this fully-unrolled (static-M) loop
    # could be replaced by a masked lax.fori_loop to bound code size.
    for m in range(M, 0, -1):
        km = f_ref[m - 1]                         # (TBS, 128)
        flag = jnp.maximum(flag, jnp.abs(km))
        kc_ref[m - 1] = jnp.clip(km, -bound, bound)
        if m > 1:
            inv_z = pl.reciprocal(1.0 - km * km)[None]   # one recip per iteration
            kb = km[None]
            f = f_ref[pl.ds(0, m - 1)]            # a_1 .. a_{m-1}
            b = r_ref[pl.ds(1, m - 1)]            # a_{m-1} .. a_1 (reverse of f)
            f_ref[pl.ds(0, m - 1)] = (f - kb * b) * inv_z
            r_ref[pl.ds(0, m - 1)] = (b - kb * f) * inv_z

    flag_ref[...] = flag                          # max_m |k_m| per batch element

    # ---- step-up: clipped PARCOR -> LPC (reuse f_ref / r_ref) ----
    k0 = kc_ref[0]
    f_ref[0] = k0
    r_ref[0] = k0
    for m in range(2, M + 1):
        km = kc_ref[m - 1]
        kb = km[None]
        f = f_ref[pl.ds(0, m - 1)]
        b = r_ref[pl.ds(0, m - 1)]
        f_ref[pl.ds(0, m - 1)] = f + kb * b
        f_ref[m - 1] = km
        r_ref[pl.ds(1, m - 1)] = b + kb * f
        r_ref[0] = km

    for i in range(M):
        out_ref[i + 1] = f_ref[i].astype(out_ref.dtype)


def _choose_tbs(S, M, tbs):
    """Sublane-batch tile size (multiple of 8)."""
    if tbs is not None:
        t = max(8, (int(tbs) // 8) * 8)
    else:
        row_bytes = (M + 1) * _LANES * 4
        t = max(8, ((512 * 1024) // row_bytes) // 8 * 8)   # ~0.5 MiB input block
        if S >= 32:
            # keep >= ~4 grid steps so megacore (v7x) sharding has work to split
            t = min(t, max(8, (S // 4) // 8 * 8))
    t = min(t, ((S + 7) // 8) * 8)                         # don't exceed padded S
    return max(8, t)


def lpccheck(a, lpc_order, margin=1e-16, warn_type="warn", tbs=None):
    """Pallas implementation of LinearPredictiveCoefficientsStabilityCheck.forward.

    a: jnp array of shape (..., M+1).  Returns (a2, unstable) where `unstable`
    is a device-side boolean scalar (no host sync when warn_type == 'ignore').
    """
    assert 0.0 < margin < 1.0
    M = int(lpc_order)
    if a.shape[-1] != M + 1:
        raise ValueError("dimension of LPC must be M+1")
    bound = 1.0 - margin
    if M == 0:
        return a, jnp.asarray(False)

    batch_shape = a.shape[:-1]
    B = 1
    for d in batch_shape:
        B *= int(d)

    S = pl.cdiv(B, _LANES)                # batch rows of 128 lanes
    t = _choose_tbs(S, M, tbs)
    Sp = pl.cdiv(S, t) * t
    Bp = Sp * _LANES

    a2d = a.reshape(B, M + 1)
    if Bp != B:
        a2d = jnp.pad(a2d, ((0, Bp - B), (0, 0)))
    # (Bp, M+1) -> (M+1, Sp, 128): coefficient index leading, batch on (sublane, lane)
    a3d = a2d.T.reshape(M + 1, Sp, _LANES)

    kernel = functools.partial(_lpccheck_kernel, bound=bound, M=M)
    out3d, flag = pl.pallas_call(
        kernel,
        out_shape=(
            jax.ShapeDtypeStruct((M + 1, Sp, _LANES), a.dtype),
            jax.ShapeDtypeStruct((Sp, _LANES), jnp.float32),
        ),
        grid_spec=pltpu.PrefetchScalarGridSpec(
            num_scalar_prefetch=0,
            grid=(Sp // t,),
            in_specs=[pl.BlockSpec((M + 1, t, _LANES), lambda i: (0, i, 0))],
            out_specs=[
                pl.BlockSpec((M + 1, t, _LANES), lambda i: (0, i, 0)),
                pl.BlockSpec((t, _LANES), lambda i: (i, 0)),
            ],
            scratch_shapes=[
                pltpu.VMEM((M, t, _LANES), jnp.float32),   # clipped PARCOR
                pltpu.VMEM((M, t, _LANES), jnp.float32),   # forward LPC body
                pltpu.VMEM((M, t, _LANES), jnp.float32),   # reversed LPC body
            ],
        ),
        compiler_params=pltpu.CompilerParams(
            dimension_semantics=("parallel",),
        ),
    )(a3d)

    out = out3d.reshape(M + 1, Bp).T[:B].reshape(a.shape)
    unstable = jnp.max(flag) >= 1.0       # padded entries contribute exactly 0

    if warn_type != "ignore":
        if bool(jax.device_get(unstable)):     # host sync only when needed
            if warn_type == "warn":
                warnings.warn("Detected unstable LPC coefficients.")
            elif warn_type == "exit":
                raise RuntimeError("Detected unstable LPC coefficients.")
            else:
                raise RuntimeError
    return out, unstable


# ----------------------------- pure-JAX reference -----------------------------
def _step_up_ref(K, k):
    M = k.shape[-1]
    cur = k[..., :1]
    for m in range(2, M + 1):
        km = k[..., m - 1:m]
        cur = jnp.concatenate([cur + km * jnp.flip(cur, axis=-1), km], axis=-1)
    return jnp.concatenate([K, cur], axis=-1)


def lpccheck_ref(a, bound):
    K = a[..., :1]
    cur = a[..., 1:]
    M = cur.shape[-1]
    ks = [None] * M
    for m in range(M, 0, -1):
        km = cur[..., m - 1:m]
        ks[m - 1] = km
        if m > 1:
            f = cur[..., : m - 1]
            b = jnp.flip(f, axis=-1)
            cur = (f - km * b) / (1.0 - km * km)
    k = jnp.concatenate(ks, axis=-1)
    kc = jnp.clip(k, -bound, bound)
    return _step_up_ref(K, kc)


if __name__ == "__main__":
    key = jax.random.PRNGKey(0)
    lpc_order = 7                      # M
    batch_shape = (4, 32)              # flattened B = 128

    k_key, g_key = jax.random.split(key)
    # stable reflection coefficients in (-0.8, 0.8) -> stable LPC input
    k_true = 0.8 * jax.random.uniform(
        k_key, batch_shape + (lpc_order,), minval=-1.0, maxval=1.0
    )
    K_gain = jax.random.normal(g_key, batch_shape + (1,))
    a = _step_up_ref(K_gain, k_true).astype(jnp.float32)   # shape (4, 32, 8)

    out, unstable = lpccheck(a, lpc_order, margin=1e-16, warn_type="warn")
    out = jax.block_until_ready(out)

    ref = lpccheck_ref(a, 1.0 - 1e-16)
    assert out.shape == a.shape and out.dtype == a.dtype
    assert not bool(jax.device_get(unstable))
    np.testing.assert_allclose(np.asarray(out), np.asarray(ref), rtol=1e-5, atol=1e-5)
    # stable input with |k| < bound must round-trip to itself
    np.testing.assert_allclose(np.asarray(out), np.asarray(a), rtol=1e-4, atol=1e-4)

    # second case: ragged batch (B not a multiple of 128), different order,
    # warn_type='ignore' exercises the no-host-sync path
    lpc_order2 = 4
    batch_shape2 = (3, 5)
    k2 = 0.7 * jax.random.uniform(
        jax.random.PRNGKey(1), batch_shape2 + (lpc_order2,), minval=-1.0, maxval=1.0
    )
    K2 = jax.random.normal(jax.random.PRNGKey(2), batch_shape2 + (1,))
    a2 = _step_up_ref(K2, k2).astype(jnp.float32)
    out2, unstable2 = lpccheck(a2, lpc_order2, margin=1e-16, warn_type="ignore")
    out2 = jax.block_until_ready(out2)
    ref2 = lpccheck_ref(a2, 1.0 - 1e-16)
    np.testing.assert_allclose(np.asarray(out2), np.asarray(ref2), rtol=1e-5, atol=1e-5)
    assert not bool(jax.device_get(unstable2))

    print("KERNEL_OK")
</pallas_src>

<mosaic_0001>
module attributes {stable_mosaic.version = 11 : i64} {
  func.func @_lpccheck_kernel(%arg0: i32, %arg1: memref<8x8x128xf32, #tpu.memory_space<vmem>>, %arg2: memref<8x8x128xf32, #tpu.memory_space<vmem>>, %arg3: memref<8x128xf32, #tpu.memory_space<vmem>>, %arg4: memref<7x8x128xf32, #tpu.memory_space<vmem>>, %arg5: memref<7x8x128xf32, #tpu.memory_space<vmem>>, %arg6: memref<7x8x128xf32, #tpu.memory_space<vmem>>) attributes {dimension_semantics = [#tpu.dimension_semantics<parallel>], iteration_bounds = array<i64: 1>, scalar_prefetch = 0 : i64, scratch_operands = 3 : i64, tpu.core_type = #tpu.core_type<tc>, window_params = [{transform_indices = @transform_0, window_bounds = array<i64: 8, 8, 128>}, {transform_indices = @transform_1, window_bounds = array<i64: 8, 8, 128>}, {transform_indices = @transform_2, window_bounds = array<i64: 8, 128>}]} {
    %c0 = arith.constant 0 : index
    %c0_0 = arith.constant 0 : index
    %c0_1 = arith.constant 0 : index
    %0 = vector.load %arg1[%c0, %c0_0, %c0_1] : memref<8x8x128xf32, #tpu.memory_space<vmem>>, vector<1x8x128xf32>
    %1 = vector.shape_cast %0 : vector<1x8x128xf32> to vector<8x128xf32>
    %c0_2 = arith.constant 0 : index
    %c0_3 = arith.constant 0 : index
    %c0_4 = arith.constant 0 : index
    %2 = vector.load %arg2[%c0_2, %c0_3, %c0_4] : memref<8x8x128xf32, #tpu.memory_space<vmem>>, vector<1x8x128xf32>
    %3 = vector.shape_cast %2 : vector<1x8x128xf32> to vector<8x128xf32>
    %4 = vector.shape_cast %1 : vector<8x128xf32> to vector<1x8x128xf32>
    tpu.vector_store %arg2[%c0_2, %c0_3, %c0_4], %4 {strides = array<i32>} : memref<8x8x128xf32, #tpu.memory_space<vmem>>, vector<1x8x128xf32>,
    %c1 = arith.constant 1 : index
    %c0_5 = arith.constant 0 : index
    %c0_6 = arith.constant 0 : index
    %5 = vector.load %arg1[%c1, %c0_5, %c0_6] : memref<8x8x128xf32, #tpu.memory_space<vmem>>, vector<1x8x128xf32>
    %6 = vector.shape_cast %5 : vector<1x8x128xf32> to vector<8x128xf32>
    %c0_7 = arith.constant 0 : index
    %c0_8 = arith.constant 0 : index
    %c0_9 = arith.constant 0 : index
    %7 = vector.load %arg5[%c0_7, %c0_8, %c0_9] : memref<7x8x128xf32, #tpu.memory_space<vmem>>, vector<1x8x128xf32>
    %8 = vector.shape_cast %7 : vector<1x8x128xf32> to vector<8x128xf32>
    %9 = vector.shape_cast %6 : vector<8x128xf32> to vector<1x8x128xf32>
    tpu.vector_store %arg5[%c0_7, %c0_8, %c0_9], %9 {strides = array<i32>} : memref<7x8x128xf32, #tpu.memory_space<vmem>>, vector<1x8x128xf32>,
    %c6 = arith.constant 6 : index
    %c0_10 = arith.constant 0 : index
    %c0_11 = arith.constant 0 : index
    %10 = vector.load %arg6[%c6, %c0_10, %c0_11] : memref<7x8x128xf32, #tpu.memory_space<vmem>>, vector<1x8x128xf32>
    %11 = vector.shape_cast %10 : vector<1x8x128xf32> to vector<8x128xf32>
    %12 = vector.shape_cast %6 : vector<8x128xf32> to vector<1x8x128xf32>
    tpu.vector_store %arg6[%c6, %c0_10, %c0_11], %12 {strides = array<i32>} : memref<7x8x128xf32, #tpu.memory_space<vmem>>, vector<1x8x128xf32>,
    %c2 = arith.constant 2 : index
    %c0_12 = arith.constant 0 : index
    %c0_13 = arith.constant 0 : index
    %13 = vector.load %arg1[%c2, %c0_12, %c0_13] : memref<8x8x128xf32, #tpu.memory_space<vmem>>, vector<1x8x128xf32>
    %14 = vector.shape_cast %13 : vector<1x8x128xf32> to vector<8x128xf32>
    %c1_14 = arith.constant 1 : index
    %c0_15 = arith.constant 0 : index
    %c0_16 = arith.constant 0 : index
    %15 = vector.load %arg5[%c1_14, %c0_15, %c0_16] : memref<7x8x128xf32, #tpu.memory_space<vmem>>, vector<1x8x128xf32>
    %16 = vector.shape_cast %15 : vector<1x8x128xf32> to vector<8x128xf32>
    %17 = vector.shape_cast %14 : vector<8x128xf32> to vector<1x8x128xf32>
    tpu.vector_store %arg5[%c1_14, %c0_15, %c0_16], %17 {strides = array<i32>} : memref<7x8x128xf32, #tpu.memory_space<vmem>>, vector<1x8x128xf32>,
    %c5 = arith.constant 5 : index
    %c0_17 = arith.constant 0 : index
    %c0_18 = arith.constant 0 : index
    %18 = vector.load %arg6[%c5, %c0_17, %c0_18] : memref<7x8x128xf32, #tpu.memory_space<vmem>>, vector<1x8x128xf32>
    %19 = vector.shape_cast %18 : vector<1x8x128xf32> to vector<8x128xf32>
    %20 = vector.shape_cast %14 : vector<8x128xf32> to vector<1x8x128xf32>
    tpu.vector_store %arg6[%c5, %c0_17, %c0_18], %20 {strides = array<i32>} : memref<7x8x128xf32, #tpu.memory_space<vmem>>, vector<1x8x128xf32>,
    %c3 = arith.constant 3 : index
    %c0_19 = arith.constant 0 : index
    %c0_20 = arith.constant 0 : index
    %21 = vector.load %arg1[%c3, %c0_19, %c0_20] : memref<8x8x128xf32, #tpu.memory_space<vmem>>, vector<1x8x128xf32>
    %22 = vector.shape_cast %21 : vector<1x8x128xf32> to vector<8x128xf32>
    %c2_21 = arith.constant 2 : index
    %c0_22 = arith.constant 0 : index
    %c0_23 = arith.constant 0 : index
    %23 = vector.load %arg5[%c2_21, %c0_22, %c0_23] : memref<7x8x128xf32, #tpu.memory_space<vmem>>, vector<1x8x128xf32>
    %24 = vector.shape_cast %23 : vector<1x8x128xf32> to vector<8x128xf32>
    %25 = vector.shape_cast %22 : vector<8x128xf32> to vector<1x8x128xf32>
    tpu.vector_store %arg5[%c2_21, %c0_22, %c0_23], %25 {strides = array<i32>} : memref<7x8x128xf32, #tpu.memory_space<vmem>>, vector<1x8x128xf32>,
    %c4 = arith.constant 4 : index
    %c0_24 = arith.constant 0 : index
    %c0_25 = arith.constant 0 : index
    %26 = vector.load %arg6[%c4, %c0_24, %c0_25] : memref<7x8x128xf32, #tpu.memory_space<vmem>>, vector<1x8x128xf32>
    %27 = vector.shape_cast %26 : vector<1x8x128xf32> to vector<8x128xf32>
    %28 = vector.shape_cast %22 : vector<8x128xf32> to vector<1x8x128xf32>
    tpu.vector_store %arg6[%c4, %c0_24, %c0_25], %28 {strides = array<i32>} : memref<7x8x128xf32, #tpu.memory_space<vmem>>, vector<1x8x128xf32>,
    %c4_26 = arith.constant 4 : index
    %c0_27 = arith.constant 0 : index
    %c0_28 = arith.constant 0 : index
    %29 = vector.load %arg1[%c4_26, %c0_27, %c0_28] : memref<8x8x128xf32, #tpu.memory_space<vmem>>, vector<1x8x128xf32>
    %30 = vector.shape_cast %29 : vector<1x8x128xf32> to vector<8x128xf32>
    %c3_29 = arith.constant 3 : index
    %c0_30 = arith.constant 0 : index
    %c0_31 = arith.constant 0 : index
    %31 = vector.load %arg5[%c3_29, %c0_30, %c0_31] : memref<7x8x128xf32, #tpu.memory_space<vmem>>, vector<1x8x128xf32>
    %32 = vector.shape_cast %31 : vector<1x8x128xf32> to vector<8x128xf32>
    %33 = vector.shape_cast %30 : vector<8x128xf32> to vector<1x8x128xf32>
    tpu.vector_store %arg5[%c3_29, %c0_30, %c0_31], %33 {strides = array<i32>} : memref<7x8x128xf32, #tpu.memory_space<vmem>>, vector<1x8x128xf32>,
    %c3_32 = arith.constant 3 : index
    %c0_33 = arith.constant 0 : index
    %c0_34 = arith.constant 0 : index
    %34 = vector.load %arg6[%c3_32, %c0_33, %c0_34] : memref<7x8x128xf32, #tpu.memory_space<vmem>>, vector<1x8x128xf32>
    %35 = vector.shape_cast %34 : vector<1x8x128xf32> to vector<8x128xf32>
    %36 = vector.shape_cast %30 : vector<8x128xf32> to vector<1x8x128xf32>
    tpu.vector_store %arg6[%c3_32, %c0_33, %c0_34], %36 {strides = array<i32>} : memref<7x8x128xf32, #tpu.memory_space<vmem>>, vector<1x8x128xf32>,
    %c5_35 = arith.constant 5 : index
    %c0_36 = arith.constant 0 : index
    %c0_37 = arith.constant 0 : index
    %37 = vector.load %arg1[%c5_35, %c0_36, %c0_37] : memref<8x8x128xf32, #tpu.memory_space<vmem>>, vector<1x8x128xf32>
    %38 = vector.shape_cast %37 : vector<1x8x128xf32> to vector<8x128xf32>
    %c4_38 = arith.constant 4 : index
    %c0_39 = arith.constant 0 : index
    %c0_40 = arith.constant 0 : index
    %39 = vector.load %arg5[%c4_38, %c0_39, %c0_40] : memref<7x8x128xf32, #tpu.memory_space<vmem>>, vector<1x8x128xf32>
    %40 = vector.shape_cast %39 : vector<1x8x128xf32> to vector<8x128xf32>
    %41 = vector.shape_cast %38 : vector<8x128xf32> to vector<1x8x128xf32>
    tpu.vector_store %arg5[%c4_38, %c0_39, %c0_40], %41 {strides = array<i32>} : memref<7x8x128xf32, #tpu.memory_space<vmem>>, vector<1x8x128xf32>,
    %c2_41 = arith.constant 2 : index
    %c0_42 = arith.constant 0 : index
    %c0_43 = arith.constant 0 : index
    %42 = vector.load %arg6[%c2_41, %c0_42, %c0_43] : memref<7x8x128xf32, #tpu.memory_space<vmem>>, vector<1x8x128xf32>
    %43 = vector.shape_cast %42 : vector<1x8x128xf32> to vector<8x128xf32>
    %44 = vector.shape_cast %38 : vector<8x128xf32> to vector<1x8x128xf32>
    tpu.vector_store %arg6[%c2_41, %c0_42, %c0_43], %44 {strides = array<i32>} : memref<7x8x128xf32, #tpu.memory_space<vmem>>, vector<1x8x128xf32>,
    %c6_44 = arith.constant 6 : index
    %c0_45 = arith.constant 0 : index
    %c0_46 = arith.constant 0 : index
    %45 = vector.load %arg1[%c6_44, %c0_45, %c0_46] : memref<8x8x128xf32, #tpu.memory_space<vmem>>, vector<1x8x128xf32>
    %46 = vector.shape_cast %45 : vector<1x8x128xf32> to vector<8x128xf32>
    %c5_47 = arith.constant 5 : index
    %c0_48 = arith.constant 0 : index
    %c0_49 = arith.constant 0 : index
    %47 = vector.load %arg5[%c5_47, %c0_48, %c0_49] : memref<7x8x128xf32, #tpu.memory_space<vmem>>, vector<1x8x128xf32>
    %48 = vector.shape_cast %47 : vector<1x8x128xf32> to vector<8x128xf32>
    %49 = vector.shape_cast %46 : vector<8x128xf32> to vector<1x8x128xf32>
    tpu.vector_store %arg5[%c5_47, %c0_48, %c0_49], %49 {strides = array<i32>} : memref<7x8x128xf32, #tpu.memory_space<vmem>>, vector<1x8x128xf32>,
    %c1_50 = arith.constant 1 : index
    %c0_51 = arith.constant 0 : index
    %c0_52 = arith.constant 0 : index
    %50 = vector.load %arg6[%c1_50, %c0_51, %c0_52] : memref<7x8x128xf32, #tpu.memory_space<vmem>>, vector<1x8x128xf32>
    %51 = vector.shape_cast %50 : vector<1x8x128xf32> to vector<8x128xf32>
    %52 = vector.shape_cast %46 : vector<8x128xf32> to vector<1x8x128xf32>
    tpu.vector_store %arg6[%c1_50, %c0_51, %c0_52], %52 {strides = array<i32>} : memref<7x8x128xf32, #tpu.memory_space<vmem>>, vector<1x8x128xf32>,
    %c7 = arith.constant 7 : index
    %c0_53 = arith.constant 0 : index
    %c0_54 = arith.constant 0 : index
    %53 = vector.load %arg1[%c7, %c0_53, %c0_54] : memref<8x8x128xf32, #tpu.memory_space<vmem>>, vector<1x8x128xf32>
    %54 = vector.shape_cast %53 : vector<1x8x128xf32> to vector<8x128xf32>
    %c6_55 = arith.constant 6 : index
    %c0_56 = arith.constant 0 : index
    %c0_57 = arith.constant 0 : index
    %55 = vector.load %arg5[%c6_55, %c0_56, %c0_57] : memref<7x8x128xf32, #tpu.memory_space<vmem>>, vector<1x8x128xf32>
    %56 = vector.shape_cast %55 : vector<1x8x128xf32> to vector<8x128xf32>
    %57 = vector.shape_cast %54 : vector<8x128xf32> to vector<1x8x128xf32>
    tpu.vector_store %arg5[%c6_55, %c0_56, %c0_57], %57 {strides = array<i32>} : memref<7x8x128xf32, #tpu.memory_space<vmem>>, vector<1x8x128xf32>,
    %c0_58 = arith.constant 0 : index
    %c0_59 = arith.constant 0 : index
    %c0_60 = arith.constant 0 : index
    %58 = vector.load %arg6[%c0_58, %c0_59, %c0_60] : memref<7x8x128xf32, #tpu.memory_space<vmem>>, vector<1x8x128xf32>
    %59 = vector.shape_cast %58 : vector<1x8x128xf32> to vector<8x128xf32>
    %60 = vector.shape_cast %54 : vector<8x128xf32> to vector<1x8x128xf32>
    tpu.vector_store %arg6[%c0_58, %c0_59, %c0_60], %60 {strides = array<i32>} : memref<7x8x128xf32, #tpu.memory_space<vmem>>, vector<1x8x128xf32>,
    %cst = arith.constant 0.000000e+00 : f32
    %61 = vector.broadcast %cst : f32 to vector<8x128xf32>
    %c6_61 = arith.constant 6 : index
    %c0_62 = arith.constant 0 : index
    %c0_63 = arith.constant 0 : index
    %62 = vector.load %arg5[%c6_61, %c0_62, %c0_63] : memref<7x8x128xf32, #tpu.memory_space<vmem>>, vector<1x8x128xf32>
    %63 = vector.shape_cast %62 : vector<1x8x128xf32> to vector<8x128xf32>
    %64 = math.absf %63 : vector<8x128xf32>
    %65 = arith.maximumf %61, %64 : vector<8x128xf32>
    %cst_64 = arith.constant -1.000000e+00 : f32
    %cst_65 = arith.constant 1.000000e+00 : f32
    %66 = vector.broadcast %cst_64 : f32 to vector<8x128xf32>
    %67 = arith.maximumf %66, %63 : vector<8x128xf32>
    %68 = vector.broadcast %cst_65 : f32 to vector<8x128xf32>
    %69 = arith.minimumf %68, %67 : vector<8x128xf32>
    %c6_66 = arith.constant 6 : index
    %c0_67 = arith.constant 0 : index
    %c0_68 = arith.constant 0 : index
    %70 = vector.load %arg4[%c6_66, %c0_67, %c0_68] : memref<7x8x128xf32, #tpu.memory_space<vmem>>, vector<1x8x128xf32>
    %71 = vector.shape_cast %70 : vector<1x8x128xf32> to vector<8x128xf32>
    %72 = vector.shape_cast %69 : vector<8x128xf32> to vector<1x8x128xf32>
    tpu.vector_store %arg4[%c6_66, %c0_67, %c0_68], %72 {strides = array<i32>} : memref<7x8x128xf32, #tpu.memory_space<vmem>>, vector<1x8x128xf32>,
    %73 = arith.mulf %63, %63 : vector<8x128xf32>
    %cst_69 = arith.constant 1.000000e+00 : f32
    %74 = vector.broadcast %cst_69 : f32 to vector<8x128xf32>
    %75 = arith.subf %74, %73 : vector<8x128xf32>
    %76 = tpu.reciprocal %75 : vector<8x128xf32> -> vector<8x128xf32>
    %77 = vector.shape_cast %76 : vector<8x128xf32> to vector<1x8x128xf32>
    %78 = vector.shape_cast %63 : vector<8x128xf32> to vector<1x8x128xf32>
    %c0_70 = arith.constant 0 : index
    %c0_71 = arith.constant 0 : index
    %c0_72 = arith.constant 0 : index
    %79 = vector.load %arg5[%c0_70, %c0_71, %c0_72] : memref<7x8x128xf32, #tpu.memory_space<vmem>>, vector<6x8x128xf32>
    %c1_73 = arith.constant 1 : index
    %c0_74 = arith.constant 0 : index
    %c0_75 = arith.constant 0 : index
    %80 = vector.load %arg6[%c1_73, %c0_74, %c0_75] : memref<7x8x128xf32, #tpu.memory_space<vmem>>, vector<6x8x128xf32>
    %81 = vector.broadcast %78 : vector<1x8x128xf32> to vector<6x8x128xf32>
    %82 = arith.mulf %81, %80 : vector<6x8x128xf32>
    %83 = arith.subf %79, %82 : vector<6x8x128xf32>
    %84 = vector.broadcast %77 : vector<1x8x128xf32> to vector<6x8x128xf32>
    %85 = arith.mulf %83, %84 : vector<6x8x128xf32>
    %c0_76 = arith.constant 0 : index
    %c0_77 = arith.constant 0 : index
    %c0_78 = arith.constant 0 : index
    %86 = vector.load %arg5[%c0_76, %c0_77, %c0_78] : memref<7x8x128xf32, #tpu.memory_space<vmem>>, vector<6x8x128xf32>
    tpu.vector_store %arg5[%c0_76, %c0_77, %c0_78], %85 {strides = array<i32>} : memref<7x8x128xf32, #tpu.memory_space<vmem>>, vector<6x8x128xf32>,
    %87 = vector.broadcast %78 : vector<1x8x128xf32> to vector<6x8x128xf32>
    %88 = arith.mulf %87, %79 : vector<6x8x128xf32>
    %89 = arith.subf %80, %88 : vector<6x8x128xf32>
    %90 = vector.broadcast %77 : vector<1x8x128xf32> to vector<6x8x128xf32>
    %91 = arith.mulf %89, %90 : vector<6x8x128xf32>
    %c0_79 = arith.constant 0 : index
    %c0_80 = arith.constant 0 : index
    %c0_81 = arith.constant 0 : index
    %92 = vector.load %arg6[%c0_79, %c0_80, %c0_81] : memref<7x8x128xf32, #tpu.memory_space<vmem>>, vector<6x8x128xf32>
    tpu.vector_store %arg6[%c0_79, %c0_80, %c0_81], %91 {strides = array<i32>} : memref<7x8x128xf32, #tpu.memory_space<vmem>>, vector<6x8x128xf32>,
    %c5_82 = arith.constant 5 : index
    %c0_83 = arith.constant 0 : index
    %c0_84 = arith.constant 0 : index
    %93 = vector.load %arg5[%c5_82, %c0_83, %c0_84] : memref<7x8x128xf32, #tpu.memory_space<vmem>>, vector<1x8x128xf32>
    %94 = vector.shape_cast %93 : vector<1x8x128xf32> to vector<8x128xf32>
    %95 = math.absf %94 : vector<8x128xf32>
    %96 = arith.maximumf %65, %95 : vector<8x128xf32>
    %cst_85 = arith.constant -1.000000e+00 : f32
    %cst_86 = arith.constant 1.000000e+00 : f32
    %97 = vector.broadcast %cst_85 : f32 to vector<8x128xf32>
    %98 = arith.maximumf %97, %94 : vector<8x128xf32>
    %99 = vector.broadcast %cst_86 : f32 to vector<8x128xf32>
    %100 = arith.minimumf %99, %98 : vector<8x128xf32>
    %c5_87 = arith.constant 5 : index
    %c0_88 = arith.constant 0 : index
    %c0_89 = arith.constant 0 : index
    %101 = vector.load %arg4[%c5_87, %c0_88, %c0_89] : memref<7x8x128xf32, #tpu.memory_space<vmem>>, vector<1x8x128xf32>
    %102 = vector.shape_cast %101 : vector<1x8x128xf32> to vector<8x128xf32>
    %103 = vector.shape_cast %100 : vector<8x128xf32> to vector<1x8x128xf32>
    tpu.vector_store %arg4[%c5_87, %c0_88, %c0_89], %103 {strides = array<i32>} : memref<7x8x128xf32, #tpu.memory_space<vmem>>, vector<1x8x128xf32>,
    %104 = arith.mulf %94, %94 : vector<8x128xf32>
    %cst_90 = arith.constant 1.000000e+00 : f32
    %105 = vector.broadcast %cst_90 : f32 to vector<8x128xf32>
    %106 = arith.subf %105, %104 : vector<8x128xf32>
    %107 = tpu.reciprocal %106 : vector<8x128xf32> -> vector<8x128xf32>
    %108 = vector.shape_cast %107 : vector<8x128xf32> to vector<1x8x128xf32>
    %109 = vector.shape_cast %94 : vector<8x128xf32> to vector<1x8x128xf32>
    %c0_91 = arith.constant 0 : index
    %c0_92 = arith.constant 0 : index
    %c0_93 = arith.constant 0 : index
    %110 = vector.load %arg5[%c0_91, %c0_92, %c0_93] : memref<7x8x128xf32, #tpu.memory_space<vmem>>, vector<5x8x128xf32>
    %c1_94 = arith.constant 1 : index
    %c0_95 = arith.constant 0 : index
    %c0_96 = arith.constant 0 : index
    %111 = vector.load %arg6[%c1_94, %c0_95, %c0_96] : memref<7x8x128xf32, #tpu.memory_space<vmem>>, vector<5x8x128xf32>
    %112 = vector.broadcast %109 : vector<1x8x128xf32> to vector<5x8x128xf32>
    %113 = arith.mulf %112, %111 : vector<5x8x128xf32>
    %114 = arith.subf %110, %113 : vector<5x8x128xf32>
    %115 = vector.broadcast %108 : vector<1x8x128xf32> to vector<5x8x128xf32>
    %116 = arith.mulf %114, %115 : vector<5x8x128xf32>
    %c0_97 = arith.constant 0 : index
    %c0_98 = arith.constant 0 : index
    %c0_99 = arith.constant 0 : index
    %117 = vector.load %arg5[%c0_97, %c0_98, %c0_99] : memref<7x8x128xf32, #tpu.memory_space<vmem>>, vector<5x8x128xf32>
    tpu.vector_store %arg5[%c0_97, %c0_98, %c0_99], %116 {strides = array<i32>} : memref<7x8x128xf32, #tpu.memory_space<vmem>>, vector<5x8x128xf32>,
    %118 = vector.broadcast %109 : vector<1x8x128xf32> to vector<5x8x128xf32>
    %119 = arith.mulf %118, %110 : vector<5x8x128xf32>
    %120 = arith.subf %111, %119 : vector<5x8x128xf32>
    %121 = vector.broadcast %108 : vector<1x8x128xf32> to vector<5x8x128xf32>
    %122 = arith.mulf %120, %121 : vector<5x8x128xf32>
    %c0_100 = arith.constant 0 : index
    %c0_101 = arith.constant 0 : index
    %c0_102 = arith.constant 0 : index
    %123 = vector.load %arg6[%c0_100, %c0_101, %c0_102] : memref<7x8x128xf32, #tpu.memory_space<vmem>>, vector<5x8x128xf32>
    tpu.vector_store %arg6[%c0_100, %c0_101, %c0_102], %122 {strides = array<i32>} : memref<7x8x128xf32, #tpu.memory_space<vmem>>, vector<5x8x128xf32>,
    %c4_103 = arith.constant 4 : index
    %c0_104 = arith.constant 0 : index
    %c0_105 = arith.constant 0 : index
    %124 = vector.load %arg5[%c4_103, %c0_104, %c0_105] : memref<7x8x128xf32, #tpu.memory_space<vmem>>, vector<1x8x128xf32>
    %125 = vector.shape_cast %124 : vector<1x8x128xf32> to vector<8x128xf32>
    %126 = math.absf %125 : vector<8x128xf32>
    %127 = arith.maximumf %96, %126 : vector<8x128xf32>
    %cst_106 = arith.constant -1.000000e+00 : f32
    %cst_107 = arith.constant 1.000000e+00 : f32
    %128 = vector.broadcast %cst_106 : f32 to vector<8x128xf32>
    %129 = arith.maximumf %128, %125 : vector<8x128xf32>
    %130 = vector.broadcast %cst_107 : f32 to vector<8x128xf32>
    %131 = arith.minimumf %130, %129 : vector<8x128xf32>
    %c4_108 = arith.constant 4 : index
    %c0_109 = arith.constant 0 : index
    %c0_110 = arith.constant 0 : index
    %132 = vector.load %arg4[%c4_108, %c0_109, %c0_110] : memref<7x8x128xf32, #tpu.memory_space<vmem>>, vector<1x8x128xf32>
    %133 = vector.shape_cast %132 : vector<1x8x128xf32> to vector<8x128xf32>
    %134 = vector.shape_cast %131 : vector<8x128xf32> to vector<1x8x128xf32>
    tpu.vector_store %arg4[%c4_108, %c0_109, %c0_110], %134 {strides = array<i32>} : memref<7x8x128xf32, #tpu.memory_space<vmem>>, vector<1x8x128xf32>,
    %135 = arith.mulf %125, %125 : vector<8x128xf32>
    %cst_111 = arith.constant 1.000000e+00 : f32
    %136 = vector.broadcast %cst_111 : f32 to vector<8x128xf32>
    %137 = arith.subf %136, %135 : vector<8x128xf32>
    %138 = tpu.reciprocal %137 : vector<8x128xf32> -> vector<8x128xf32>
    %139 = vector.shape_cast %138 : vector<8x128xf32> to vector<1x8x128xf32>
    %140 = vector.shape_cast %125 : vector<8x128xf32> to vector<1x8x128xf32>
    %c0_112 = arith.constant 0 : index
    %c0_113 = arith.constant 0 : index
    %c0_114 = arith.constant 0 : index
    %141 = vector.load %arg5[%c0_112, %c0_113, %c0_114] : memref<7x8x128xf32, #tpu.memory_space<vmem>>, vector<4x8x128xf32>
    %c1_115 = arith.constant 1 : index
    %c0_116 = arith.constant 0 : index
    %c0_117 = arith.constant 0 : index
    %142 = vector.load %arg6[%c1_115, %c0_116, %c0_117] : memref<7x8x128xf32, #tpu.memory_space<vmem>>, vector<4x8x128xf32>
    %143 = vector.broadcast %140 : vector<1x8x128xf32> to vector<4x8x128xf32>
    %144 = arith.mulf %143, %142 : vector<4x8x128xf32>
    %145 = arith.subf %141, %144 : vector<4x8x128xf32>
    %146 = vector.broadcast %139 : vector<1x8x128xf32> to vector<4x8x128xf32>
    %147 = arith.mulf %145, %146 : vector<4x8x128xf32>
    %c0_118 = arith.constant 0 : index
    %c0_119 = arith.constant 0 : index
    %c0_120 = arith.constant 0 : index
    %148 = vector.load %arg5[%c0_118, %c0_119, %c0_120] : memref<7x8x128xf32, #tpu.memory_space<vmem>>, vector<4x8x128xf32>
    tpu.vector_store %arg5[%c0_118, %c0_119, %c0_120], %147 {strides = array<i32>} : memref<7x8x128xf32, #tpu.memory_space<vmem>>, vector<4x8x128xf32>,
    %149 = vector.broadcast %140 : vector<1x8x128xf32> to vector<4x8x128xf32>
    %150 = arith.mulf %149, %141 : vector<4x8x128xf32>
    %151 = arith.subf %142, %150 : vector<4x8x128xf32>
    %152 = vector.broadcast %139 : vector<1x8x128xf32> to vector<4x8x128xf32>
    %153 = arith.mulf %151, %152 : vector<4x8x128xf32>
    %c0_121 = arith.constant 0 : index
    %c0_122 = arith.constant 0 : index
    %c0_123 = arith.constant 0 : index
    %154 = vector.load %arg6[%c0_121, %c0_122, %c0_123] : memref<7x8x128xf32, #tpu.memory_space<vmem>>, vector<4x8x128xf32>
    tpu.vector_store %arg6[%c0_121, %c0_122, %c0_123], %153 {strides = array<i32>} : memref<7x8x128xf32, #tpu.memory_space<vmem>>, vector<4x8x128xf32>,
    %c3_124 = arith.constant 3 : index
    %c0_125 = arith.constant 0 : index
    %c0_126 = arith.constant 0 : index
    %155 = vector.load %arg5[%c3_124, %c0_125, %c0_126] : memref<7x8x128xf32, #tpu.memory_space<vmem>>, vector<1x8x128xf32>
    %156 = vector.shape_cast %155 : vector<1x8x128xf32> to vector<8x128xf32>
    %157 = math.absf %156 : vector<8x128xf32>
    %158 = arith.maximumf %127, %157 : vector<8x128xf32>
    %cst_127 = arith.constant -1.000000e+00 : f32
    %cst_128 = arith.constant 1.000000e+00 : f32
    %159 = vector.broadcast %cst_127 : f32 to vector<8x128xf32>
    %160 = arith.maximumf %159, %156 : vector<8x128xf32>
    %161 = vector.broadcast %cst_128 : f32 to vector<8x128xf32>
    %162 = arith.minimumf %161, %160 : vector<8x128xf32>
    %c3_129 = arith.constant 3 : index
    %c0_130 = arith.constant 0 : index
    %c0_131 = arith.constant 0 : index
    %163 = vector.load %arg4[%c3_129, %c0_130, %c0_131] : memref<7x8x128xf32, #tpu.memory_space<vmem>>, vector<1x8x128xf32>
    %164 = vector.shape_cast %163 : vector<1x8x128xf32> to vector<8x128xf32>
    %165 = vector.shape_cast %162 : vector<8x128xf32> to vector<1x8x128xf32>
    tpu.vector_store %arg4[%c3_129, %c0_130, %c0_131], %165 {strides = array<i32>} : memref<7x8x128xf32, #tpu.memory_space<vmem>>, vector<1x8x128xf32>,
    %166 = arith.mulf %156, %156 : vector<8x128xf32>
    %cst_132 = arith.constant 1.000000e+00 : f32
    %167 = vector.broadcast %cst_132 : f32 to vector<8x128xf32>
    %168 = arith.subf %167, %166 : vector<8x128xf32>
    %169 = tpu.reciprocal %168 : vector<8x128xf32> -> vector<8x128xf32>
    %170 = vector.shape_cast %169 : vector<8x128xf32> to vector<1x8x128xf32>
    %171 = vector.shape_cast %156 : vector<8x128xf32> to vector<1x8x128xf32>
    %c0_133 = arith.constant 0 : index
    %c0_134 = arith.constant 0 : index
    %c0_135 = arith.constant 0 : index
    %172 = vector.load %arg5[%c0_133, %c0_134, %c0_135] : memref<7x8x128xf32, #tpu.memory_space<vmem>>, vector<3x8x128xf32>
    %c1_136 = arith.constant 1 : index
    %c0_137 = arith.constant 0 : index
    %c0_138 = arith.constant 0 : index
    %173 = vector.load %arg6[%c1_136, %c0_137, %c0_138] : memref<7x8x128xf32, #tpu.memory_space<vmem>>, vector<3x8x128xf32>
    %174 = vector.broadcast %171 : vector<1x8x128xf32> to vector<3x8x128xf32>
    %175 = arith.mulf %174, %173 : vector<3x8x128xf32>
    %176 = arith.subf %172, %175 : vector<3x8x128xf32>
    %177 = vector.broadcast %170 : vector<1x8x128xf32> to vector<3x8x128xf32>
    %178 = arith.mulf %176, %177 : vector<3x8x128xf32>
    %c0_139 = arith.constant 0 : index
    %c0_140 = arith.constant 0 : index
    %c0_141 = arith.constant 0 : index
    %179 = vector.load %arg5[%c0_139, %c0_140, %c0_141] : memref<7x8x128xf32, #tpu.memory_space<vmem>>, vector<3x8x128xf32>
    tpu.vector_store %arg5[%c0_139, %c0_140, %c0_141], %178 {strides = array<i32>} : memref<7x8x128xf32, #tpu.memory_space<vmem>>, vector<3x8x128xf32>,
    %180 = vector.broadcast %171 : vector<1x8x128xf32> to vector<3x8x128xf32>
    %181 = arith.mulf %180, %172 : vector<3x8x128xf32>
    %182 = arith.subf %173, %181 : vector<3x8x128xf32>
    %183 = vector.broadcast %170 : vector<1x8x128xf32> to vector<3x8x128xf32>
    %184 = arith.mulf %182, %183 : vector<3x8x128xf32>
    %c0_142 = arith.constant 0 : index
    %c0_143 = arith.constant 0 : index
    %c0_144 = arith.constant 0 : index
    %185 = vector.load %arg6[%c0_142, %c0_143, %c0_144] : memref<7x8x128xf32, #tpu.memory_space<vmem>>, vector<3x8x128xf32>
    tpu.vector_store %arg6[%c0_142, %c0_143, %c0_144], %184 {strides = array<i32>} : memref<7x8x128xf32, #tpu.memory_space<vmem>>, vector<3x8x128xf32>,
    %c2_145 = arith.constant 2 : index
    %c0_146 = arith.constant 0 : index
    %c0_147 = arith.constant 0 : index
    %186 = vector.load %arg5[%c2_145, %c0_146, %c0_147] : memref<7x8x128xf32, #tpu.memory_space<vmem>>, vector<1x8x128xf32>
    %187 = vector.shape_cast %186 : vector<1x8x128xf32> to vector<8x128xf32>
    %188 = math.absf %187 : vector<8x128xf32>
    %189 = arith.maximumf %158, %188 : vector<8x128xf32>
    %cst_148 = arith.constant -1.000000e+00 : f32
    %cst_149 = arith.constant 1.000000e+00 : f32
    %190 = vector.broadcast %cst_148 : f32 to vector<8x128xf32>
    %191 = arith.maximumf %190, %187 : vector<8x128xf32>
    %192 = vector.broadcast %cst_149 : f32 to vector<8x128xf32>
    %193 = arith.minimumf %192, %191 : vector<8x128xf32>
    %c2_150 = arith.constant 2 : index
    %c0_151 = arith.constant 0 : index
    %c0_152 = arith.constant 0 : index
    %194 = vector.load %arg4[%c2_150, %c0_151, %c0_152] : memref<7x8x128xf32, #tpu.memory_space<vmem>>, vector<1x8x128xf32>
    %195 = vector.shape_cast %194 : vector<1x8x128xf32> to vector<8x128xf32>
    %196 = vector.shape_cast %193 : vector<8x128xf32> to vector<1x8x128xf32>
    tpu.vector_store %arg4[%c2_150, %c0_151, %c0_152], %196 {strides = array<i32>} : memref<7x8x128xf32, #tpu.memory_space<vmem>>, vector<1x8x128xf32>,
    %197 = arith.mulf %187, %187 : vector<8x128xf32>
    %cst_153 = arith.constant 1.000000e+00 : f32
    %198 = vector.broadcast %cst_153 : f32 to vector<8x128xf32>
    %199 = arith.subf %198, %197 : vector<8x128xf32>
    %200 = tpu.reciprocal %199 : vector<8x128xf32> -> vector<8x128xf32>
    %201 = vector.shape_cast %200 : vector<8x128xf32> to vector<1x8x128xf32>
    %202 = vector.shape_cast %187 : vector<8x128xf32> to vector<1x8x128xf32>
    %c0_154 = arith.constant 0 : index
    %c0_155 = arith.constant 0 : index
    %c0_156 = arith.constant 0 : index
    %203 = vector.load %arg5[%c0_154, %c0_155, %c0_156] : memref<7x8x128xf32, #tpu.memory_space<vmem>>, vector<2x8x128xf32>
    %c1_157 = arith.constant 1 : index
    %c0_158 = arith.constant 0 : index
    %c0_159 = arith.constant 0 : index
    %204 = vector.load %arg6[%c1_157, %c0_158, %c0_159] : memref<7x8x128xf32, #tpu.memory_space<vmem>>, vector<2x8x128xf32>
    %205 = vector.broadcast %202 : vector<1x8x128xf32> to vector<2x8x128xf32>
    %206 = arith.mulf %205, %204 : vector<2x8x128xf32>
    %207 = arith.subf %203, %206 : vector<2x8x128xf32>
    %208 = vector.broadcast %201 : vector<1x8x128xf32> to vector<2x8x128xf32>
    %209 = arith.mulf %207, %208 : vector<2x8x128xf32>
    %c0_160 = arith.constant 0 : index
    %c0_161 = arith.constant 0 : index
    %c0_162 = arith.constant 0 : index
    %210 = vector.load %arg5[%c0_160, %c0_161, %c0_162] : memref<7x8x128xf32, #tpu.memory_space<vmem>>, vector<2x8x128xf32>
    tpu.vector_store %arg5[%c0_160, %c0_161, %c0_162], %209 {strides = array<i32>} : memref<7x8x128xf32, #tpu.memory_space<vmem>>, vector<2x8x128xf32>,
    %211 = vector.broadcast %202 : vector<1x8x128xf32> to vector<2x8x128xf32>
    %212 = arith.mulf %211, %203 : vector<2x8x128xf32>
    %213 = arith.subf %204, %212 : vector<2x8x128xf32>
    %214 = vector.broadcast %201 : vector<1x8x128xf32> to vector<2x8x128xf32>
    %215 = arith.mulf %213, %214 : vector<2x8x128xf32>
    %c0_163 = arith.constant 0 : index
    %c0_164 = arith.constant 0 : index
    %c0_165 = arith.constant 0 : index
    %216 = vector.load %arg6[%c0_163, %c0_164, %c0_165] : memref<7x8x128xf32, #tpu.memory_space<vmem>>, vector<2x8x128xf32>
    tpu.vector_store %arg6[%c0_163, %c0_164, %c0_165], %215 {strides = array<i32>} : memref<7x8x128xf32, #tpu.memory_space<vmem>>, vector<2x8x128xf32>,
    %c1_166 = arith.constant 1 : index
    %c0_167 = arith.constant 0 : index
    %c0_168 = arith.constant 0 : index
    %217 = vector.load %arg5[%c1_166, %c0_167, %c0_168] : memref<7x8x128xf32, #tpu.memory_space<vmem>>, vector<1x8x128xf32>
    %218 = vector.shape_cast %217 : vector<1x8x128xf32> to vector<8x128xf32>
    %219 = math.absf %218 : vector<8x128xf32>
    %220 = arith.maximumf %189, %219 : vector<8x128xf32>
    %cst_169 = arith.constant -1.000000e+00 : f32
    %cst_170 = arith.constant 1.000000e+00 : f32
    %221 = vector.broadcast %cst_169 : f32 to vector<8x128xf32>
    %222 = arith.maximumf %221, %218 : vector<8x128xf32>
    %223 = vector.broadcast %cst_170 : f32 to vector<8x128xf32>
    %224 = arith.minimumf %223, %222 : vector<8x128xf32>
    %c1_171 = arith.constant 1 : index
    %c0_172 = arith.constant 0 : index
    %c0_173 = arith.constant 0 : index
    %225 = vector.load %arg4[%c1_171, %c0_172, %c0_173] : memref<7x8x128xf32, #tpu.memory_space<vmem>>, vector<1x8x128xf32>
    %226 = vector.shape_cast %225 : vector<1x8x128xf32> to vector<8x128xf32>
    %227 = vector.shape_cast %224 : vector<8x128xf32> to vector<1x8x128xf32>
    tpu.vector_store %arg4[%c1_171, %c0_172, %c0_173], %227 {strides = array<i32>} : memref<7x8x128xf32, #tpu.memory_space<vmem>>, vector<1x8x128xf32>,
    %228 = arith.mulf %218, %218 : vector<8x128xf32>
    %cst_174 = arith.constant 1.000000e+00 : f32
    %229 = vector.broadcast %cst_174 : f32 to vector<8x128xf32>
    %230 = arith.subf %229, %228 : vector<8x128xf32>
    %231 = tpu.reciprocal %230 : vector<8x128xf32> -> vector<8x128xf32>
    %232 = vector.shape_cast %231 : vector<8x128xf32> to vector<1x8x128xf32>
    %233 = vector.shape_cast %218 : vector<8x128xf32> to vector<1x8x128xf32>
    %c0_175 = arith.constant 0 : index
    %c0_176 = arith.constant 0 : index
    %c0_177 = arith.constant 0 : index
    %234 = vector.load %arg5[%c0_175, %c0_176, %c0_177] : memref<7x8x128xf32, #tpu.memory_space<vmem>>, vector<1x8x128xf32>
    %c1_178 = arith.constant 1 : index
    %c0_179 = arith.constant 0 : index
    %c0_180 = arith.constant 0 : index
    %235 = vector.load %arg6[%c1_178, %c0_179, %c0_180] : memref<7x8x128xf32, #tpu.memory_space<vmem>>, vector<1x8x128xf32>
    %236 = arith.mulf %233, %235 : vector<1x8x128xf32>
    %237 = arith.subf %234, %236 : vector<1x8x128xf32>
    %238 = arith.mulf %237, %232 : vector<1x8x128xf32>
    %c0_181 = arith.constant 0 : index
    %c0_182 = arith.constant 0 : index
    %c0_183 = arith.constant 0 : index
    %239 = vector.load %arg5[%c0_181, %c0_182, %c0_183] : memref<7x8x128xf32, #tpu.memory_space<vmem>>, vector<1x8x128xf32>
    tpu.vector_store %arg5[%c0_181, %c0_182, %c0_183], %238 {strides = array<i32>} : memref<7x8x128xf32, #tpu.memory_space<vmem>>, vector<1x8x128xf32>,
    %240 = arith.mulf %233, %234 : vector<1x8x128xf32>
    %241 = arith.subf %235, %240 : vector<1x8x128xf32>
    %242 = arith.mulf %241, %232 : vector<1x8x128xf32>
    %c0_184 = arith.constant 0 : index
    %c0_185 = arith.constant 0 : index
    %c0_186 = arith.constant 0 : index
    %243 = vector.load %arg6[%c0_184, %c0_185, %c0_186] : memref<7x8x128xf32, #tpu.memory_space<vmem>>, vector<1x8x128xf32>
    tpu.vector_store %arg6[%c0_184, %c0_185, %c0_186], %242 {strides = array<i32>} : memref<7x8x128xf32, #tpu.memory_space<vmem>>, vector<1x8x128xf32>,
    %c0_187 = arith.constant 0 : index
    %c0_188 = arith.constant 0 : index
    %c0_189 = arith.constant 0 : index
    %244 = vector.load %arg5[%c0_187, %c0_188, %c0_189] : memref<7x8x128xf32, #tpu.memory_space<vmem>>, vector<1x8x128xf32>
    %245 = vector.shape_cast %244 : vector<1x8x128xf32> to vector<8x128xf32>
    %246 = math.absf %245 : vector<8x128xf32>
    %247 = arith.maximumf %220, %246 : vector<8x128xf32>
    %cst_190 = arith.constant -1.000000e+00 : f32
    %cst_191 = arith.constant 1.000000e+00 : f32
    %248 = vector.broadcast %cst_190 : f32 to vector<8x128xf32>
    %249 = arith.maximumf %248, %245 : vector<8x128xf32>
    %250 = vector.broadcast %cst_191 : f32 to vector<8x128xf32>
    %251 = arith.minimumf %250, %249 : vector<8x128xf32>
    %c0_192 = arith.constant 0 : index
    %c0_193 = arith.constant 0 : index
    %c0_194 = arith.constant 0 : index
    %252 = vector.load %arg4[%c0_192, %c0_193, %c0_194] : memref<7x8x128xf32, #tpu.memory_space<vmem>>, vector<1x8x128xf32>
    %253 = vector.shape_cast %252 : vector<1x8x128xf32> to vector<8x128xf32>
    %254 = vector.shape_cast %251 : vector<8x128xf32> to vector<1x8x128xf32>
    tpu.vector_store %arg4[%c0_192, %c0_193, %c0_194], %254 {strides = array<i32>} : memref<7x8x128xf32, #tpu.memory_space<vmem>>, vector<1x8x128xf32>,
    %c0_195 = arith.constant 0 : index
    %c0_196 = arith.constant 0 : index
    %255 = vector.load %arg3[%c0_195, %c0_196] : memref<8x128xf32, #tpu.memory_space<vmem>>, vector<8x128xf32>
    tpu.vector_store %arg3[%c0_195, %c0_196], %247 {strides = array<i32>} : memref<8x128xf32, #tpu.memory_space<vmem>>, vector<8x128xf32>,
    %c0_197 = arith.constant 0 : index
    %c0_198 = arith.constant 0 : index
    %c0_199 = arith.constant 0 : index
    %256 = vector.load %arg4[%c0_197, %c0_198, %c0_199] : memref<7x8x128xf32, #tpu.memory_space<vmem>>, vector<1x8x128xf32>
    %257 = vector.shape_cast %256 : vector<1x8x128xf32> to vector<8x128xf32>
    %c0_200 = arith.constant 0 : index
    %c0_201 = arith.constant 0 : index
    %c0_202 = arith.constant 0 : index
    %258 = vector.load %arg5[%c0_200, %c0_201, %c0_202] : memref<7x8x128xf32, #tpu.memory_space<vmem>>, vector<1x8x128xf32>
    %259 = vector.shape_cast %258 : vector<1x8x128xf32> to vector<8x128xf32>
    %260 = vector.shape_cast %257 : vector<8x128xf32> to vector<1x8x128xf32>
    tpu.vector_store %arg5[%c0_200, %c0_201, %c0_202], %260 {strides = array<i32>} : memref<7x8x128xf32, #tpu.memory_space<vmem>>, vector<1x8x128xf32>,
    %c0_203 = arith.constant 0 : index
    %c0_204 = arith.constant 0 : index
    %c0_205 = arith.constant 0 : index
    %261 = vector.load %arg6[%c0_203, %c0_204, %c0_205] : memref<7x8x128xf32, #tpu.memory_space<vmem>>, vector<1x8x128xf32>
    %262 = vector.shape_cast %261 : vector<1x8x128xf32> to vector<8x128xf32>
    %263 = vector.shape_cast %257 : vector<8x128xf32> to vector<1x8x128xf32>
    tpu.vector_store %arg6[%c0_203, %c0_204, %c0_205], %263 {strides = array<i32>} : memref<7x8x128xf32, #tpu.memory_space<vmem>>, vector<1x8x128xf32>,
    %c1_206 = arith.constant 1 : index
    %c0_207 = arith.constant 0 : index
    %c0_208 = arith.constant 0 : index
    %264 = vector.load %arg4[%c1_206, %c0_207, %c0_208] : memref<7x8x128xf32, #tpu.memory_space<vmem>>, vector<1x8x128xf32>
    %265 = vector.shape_cast %264 : vector<1x8x128xf32> to vector<8x128xf32>
    %266 = vector.shape_cast %265 : vector<8x128xf32> to vector<1x8x128xf32>
    %c0_209 = arith.constant 0 : index
    %c0_210 = arith.constant 0 : index
    %c0_211 = arith.constant 0 : index
    %267 = vector.load %arg5[%c0_209, %c0_210, %c0_211] : memref<7x8x128xf32, #tpu.memory_space<vmem>>, vector<1x8x128xf32>
    %c0_212 = arith.constant 0 : index
    %c0_213 = arith.constant 0 : index
    %c0_214 = arith.constant 0 : index
    %268 = vector.load %arg6[%c0_212, %c0_213, %c0_214] : memref<7x8x128xf32, #tpu.memory_space<vmem>>, vector<1x8x128xf32>
    %269 = arith.mulf %266, %268 : vector<1x8x128xf32>
    %270 = arith.addf %267, %269 : vector<1x8x128xf32>
    %c0_215 = arith.constant 0 : index
    %c0_216 = arith.constant 0 : index
    %c0_217 = arith.constant 0 : index
    %271 = vector.load %arg5[%c0_215, %c0_216, %c0_217] : memref<7x8x128xf32, #tpu.memory_space<vmem>>, vector<1x8x128xf32>
    tpu.vector_store %arg5[%c0_215, %c0_216, %c0_217], %270 {strides = array<i32>} : memref<7x8x128xf32, #tpu.memory_space<vmem>>, vector<1x8x128xf32>,
    %c1_218 = arith.constant 1 : index
    %c0_219 = arith.constant 0 : index
    %c0_220 = arith.constant 0 : index
    %272 = vector.load %arg5[%c1_218, %c0_219, %c0_220] : memref<7x8x128xf32, #tpu.memory_space<vmem>>, vector<1x8x128xf32>
    %273 = vector.shape_cast %272 : vector<1x8x128xf32> to vector<8x128xf32>
    %274 = vector.shape_cast %265 : vector<8x128xf32> to vector<1x8x128xf32>
    tpu.vector_store %arg5[%c1_218, %c0_219, %c0_220], %274 {strides = array<i32>} : memref<7x8x128xf32, #tpu.memory_space<vmem>>, vector<1x8x128xf32>,
    %275 = arith.mulf %266, %267 : vector<1x8x128xf32>
    %276 = arith.addf %268, %275 : vector<1x8x128xf32>
    %c1_221 = arith.constant 1 : index
    %c0_222 = arith.constant 0 : index
    %c0_223 = arith.constant 0 : index
    %277 = vector.load %arg6[%c1_221, %c0_222, %c0_223] : memref<7x8x128xf32, #tpu.memory_space<vmem>>, vector<1x8x128xf32>
    tpu.vector_store %arg6[%c1_221, %c0_222, %c0_223], %276 {strides = array<i32>} : memref<7x8x128xf32, #tpu.memory_space<vmem>>, vector<1x8x128xf32>,
    %c0_224 = arith.constant 0 : index
    %c0_225 = arith.constant 0 : index
    %c0_226 = arith.constant 0 : index
    %278 = vector.load %arg6[%c0_224, %c0_225, %c0_226] : memref<7x8x128xf32, #tpu.memory_space<vmem>>, vector<1x8x128xf32>
    %279 = vector.shape_cast %278 : vector<1x8x128xf32> to vector<8x128xf32>
    %280 = vector.shape_cast %265 : vector<8x128xf32> to vector<1x8x128xf32>
    tpu.vector_store %arg6[%c0_224, %c0_225, %c0_226], %280 {strides = array<i32>} : memref<7x8x128xf32, #tpu.memory_space<vmem>>, vector<1x8x128xf32>,
    %c2_227 = arith.constant 2 : index
    %c0_228 = arith.constant 0 : index
    %c0_229 = arith.constant 0 : index
    %281 = vector.load %arg4[%c2_227, %c0_228, %c0_229] : memref<7x8x128xf32, #tpu.memory_space<vmem>>, vector<1x8x128xf32>
    %282 = vector.shape_cast %281 : vector<1x8x128xf32> to vector<8x128xf32>
    %283 = vector.shape_cast %282 : vector<8x128xf32> to vector<1x8x128xf32>
    %c0_230 = arith.constant 0 : index
    %c0_231 = arith.constant 0 : index
    %c0_232 = arith.constant 0 : index
    %284 = vector.load %arg5[%c0_230, %c0_231, %c0_232] : memref<7x8x128xf32, #tpu.memory_space<vmem>>, vector<2x8x128xf32>
    %c0_233 = arith.constant 0 : index
    %c0_234 = arith.constant 0 : index
    %c0_235 = arith.constant 0 : index
    %285 = vector.load %arg6[%c0_233, %c0_234, %c0_235] : memref<7x8x128xf32, #tpu.memory_space<vmem>>, vector<2x8x128xf32>
    %286 = vector.broadcast %283 : vector<1x8x128xf32> to vector<2x8x128xf32>
    %287 = arith.mulf %286, %285 : vector<2x8x128xf32>
    %288 = arith.addf %284, %287 : vector<2x8x128xf32>
    %c0_236 = arith.constant 0 : index
    %c0_237 = arith.constant 0 : index
    %c0_238 = arith.constant 0 : index
    %289 = vector.load %arg5[%c0_236, %c0_237, %c0_238] : memref<7x8x128xf32, #tpu.memory_space<vmem>>, vector<2x8x128xf32>
    tpu.vector_store %arg5[%c0_236, %c0_237, %c0_238], %288 {strides = array<i32>} : memref<7x8x128xf32, #tpu.memory_space<vmem>>, vector<2x8x128xf32>,
    %c2_239 = arith.constant 2 : index
    %c0_240 = arith.constant 0 : index
    %c0_241 = arith.constant 0 : index
    %290 = vector.load %arg5[%c2_239, %c0_240, %c0_241] : memref<7x8x128xf32, #tpu.memory_space<vmem>>, vector<1x8x128xf32>
    %291 = vector.shape_cast %290 : vector<1x8x128xf32> to vector<8x128xf32>
    %292 = vector.shape_cast %282 : vector<8x128xf32> to vector<1x8x128xf32>
    tpu.vector_store %arg5[%c2_239, %c0_240, %c0_241], %292 {strides = array<i32>} : memref<7x8x128xf32, #tpu.memory_space<vmem>>, vector<1x8x128xf32>,
    %293 = vector.broadcast %283 : vector<1x8x128xf32> to vector<2x8x128xf32>
    %294 = arith.mulf %293, %284 : vector<2x8x128xf32>
    %295 = arith.addf %285, %294 : vector<2x8x128xf32>
    %c1_242 = arith.constant 1 : index
    %c0_243 = arith.constant 0 : index
    %c0_244 = arith.constant 0 : index
    %296 = vector.load %arg6[%c1_242, %c0_243, %c0_244] : memref<7x8x128xf32, #tpu.memory_space<vmem>>, vector<2x8x128xf32>
    tpu.vector_store %arg6[%c1_242, %c0_243, %c0_244], %295 {strides = array<i32>} : memref<7x8x128xf32, #tpu.memory_space<vmem>>, vector<2x8x128xf32>,
    %c0_245 = arith.constant 0 : index
    %c0_246 = arith.constant 0 : index
    %c0_247 = arith.constant 0 : index
    %297 = vector.load %arg6[%c0_245, %c0_246, %c0_247] : memref<7x8x128xf32, #tpu.memory_space<vmem>>, vector<1x8x128xf32>
    %298 = vector.shape_cast %297 : vector<1x8x128xf32> to vector<8x128xf32>
    %299 = vector.shape_cast %282 : vector<8x128xf32> to vector<1x8x128xf32>
    tpu.vector_store %arg6[%c0_245, %c0_246, %c0_247], %299 {strides = array<i32>} : memref<7x8x128xf32, #tpu.memory_space<vmem>>, vector<1x8x128xf32>,
    %c3_248 = arith.constant 3 : index
    %c0_249 = arith.constant 0 : index
    %c0_250 = arith.constant 0 : index
    %300 = vector.load %arg4[%c3_248, %c0_249, %c0_250] : memref<7x8x128xf32, #tpu.memory_space<vmem>>, vector<1x8x128xf32>
    %301 = vector.shape_cast %300 : vector<1x8x128xf32> to vector<8x128xf32>
    %302 = vector.shape_cast %301 : vector<8x128xf32> to vector<1x8x128xf32>
    %c0_251 = arith.constant 0 : index
    %c0_252 = arith.constant 0 : index
    %c0_253 = arith.constant 0 : index
    %303 = vector.load %arg5[%c0_251, %c0_252, %c0_253] : memref<7x8x128xf32, #tpu.memory_space<vmem>>, vector<3x8x128xf32>
    %c0_254 = arith.constant 0 : index
    %c0_255 = arith.constant 0 : index
    %c0_256 = arith.constant 0 : index
    %304 = vector.load %arg6[%c0_254, %c0_255, %c0_256] : memref<7x8x128xf32, #tpu.memory_space<vmem>>, vector<3x8x128xf32>
    %305 = vector.broadcast %302 : vector<1x8x128xf32> to vector<3x8x128xf32>
    %306 = arith.mulf %305, %304 : vector<3x8x128xf32>
    %307 = arith.addf %303, %306 : vector<3x8x128xf32>
    %c0_257 = arith.constant 0 : index
    %c0_258 = arith.constant 0 : index
    %c0_259 = arith.constant 0 : index
    %308 = vector.load %arg5[%c0_257, %c0_258, %c0_259] : memref<7x8x128xf32, #tpu.memory_space<vmem>>, vector<3x8x128xf32>
    tpu.vector_store %arg5[%c0_257, %c0_258, %c0_259], %307 {strides = array<i32>} : memref<7x8x128xf32, #tpu.memory_space<vmem>>, vector<3x8x128xf32>,
    %c3_260 = arith.constant 3 : index
    %c0_261 = arith.constant 0 : index
    %c0_262 = arith.constant 0 : index
    %309 = vector.load %arg5[%c3_260, %c0_261, %c0_262] : memref<7x8x128xf32, #tpu.memory_space<vmem>>, vector<1x8x128xf32>
    %310 = vector.shape_cast %309 : vector<1x8x128xf32> to vector<8x128xf32>
    %311 = vector.shape_cast %301 : vector<8x128xf32> to vector<1x8x128xf32>
    tpu.vector_store %arg5[%c3_260, %c0_261, %c0_262], %311 {strides = array<i32>} : memref<7x8x128xf32, #tpu.memory_space<vmem>>, vector<1x8x128xf32>,
    %312 = vector.broadcast %302 : vector<1x8x128xf32> to vector<3x8x128xf32>
    %313 = arith.mulf %312, %303 : vector<3x8x128xf32>
    %314 = arith.addf %304, %313 : vector<3x8x128xf32>
    %c1_263 = arith.constant 1 : index
    %c0_264 = arith.constant 0 : index
    %c0_265 = arith.constant 0 : index
    %315 = vector.load %arg6[%c1_263, %c0_264, %c0_265] : memref<7x8x128xf32, #tpu.memory_space<vmem>>, vector<3x8x128xf32>
    tpu.vector_store %arg6[%c1_263, %c0_264, %c0_265], %314 {strides = array<i32>} : memref<7x8x128xf32, #tpu.memory_space<vmem>>, vector<3x8x128xf32>,
    %c0_266 = arith.constant 0 : index
    %c0_267 = arith.constant 0 : index
    %c0_268 = arith.constant 0 : index
    %316 = vector.load %arg6[%c0_266, %c0_267, %c0_268] : memref<7x8x128xf32, #tpu.memory_space<vmem>>, vector<1x8x128xf32>
    %317 = vector.shape_cast %316 : vector<1x8x128xf32> to vector<8x128xf32>
    %318 = vector.shape_cast %301 : vector<8x128xf32> to vector<1x8x128xf32>
    tpu.vector_store %arg6[%c0_266, %c0_267, %c0_268], %318 {strides = array<i32>} : memref<7x8x128xf32, #tpu.memory_space<vmem>>, vector<1x8x128xf32>,
    %c4_269 = arith.constant 4 : index
    %c0_270 = arith.constant 0 : index
    %c0_271 = arith.constant 0 : index
    %319 = vector.load %arg4[%c4_269, %c0_270, %c0_271] : memref<7x8x128xf32, #tpu.memory_space<vmem>>, vector<1x8x128xf32>
    %320 = vector.shape_cast %319 : vector<1x8x128xf32> to vector<8x128xf32>
    %321 = vector.shape_cast %320 : vector<8x128xf32> to vector<1x8x128xf32>
    %c0_272 = arith.constant 0 : index
    %c0_273 = arith.constant 0 : index
    %c0_274 = arith.constant 0 : index
    %322 = vector.load %arg5[%c0_272, %c0_273, %c0_274] : memref<7x8x128xf32, #tpu.memory_space<vmem>>, vector<4x8x128xf32>
    %c0_275 = arith.constant 0 : index
    %c0_276 = arith.constant 0 : index
    %c0_277 = arith.constant 0 : index
    %323 = vector.load %arg6[%c0_275, %c0_276, %c0_277] : memref<7x8x128xf32, #tpu.memory_space<vmem>>, vector<4x8x128xf32>
    %324 = vector.broadcast %321 : vector<1x8x128xf32> to vector<4x8x128xf32>
    %325 = arith.mulf %324, %323 : vector<4x8x128xf32>
    %326 = arith.addf %322, %325 : vector<4x8x128xf32>
    %c0_278 = arith.constant 0 : index
    %c0_279 = arith.constant 0 : index
    %c0_280 = arith.constant 0 : index
    %327 = vector.load %arg5[%c0_278, %c0_279, %c0_280] : memref<7x8x128xf32, #tpu.memory_space<vmem>>, vector<4x8x128xf32>
    tpu.vector_store %arg5[%c0_278, %c0_279, %c0_280], %326 {strides = array<i32>} : memref<7x8x128xf32, #tpu.memory_space<vmem>>, vector<4x8x128xf32>,
    %c4_281 = arith.constant 4 : index
    %c0_282 = arith.constant 0 : index
    %c0_283 = arith.constant 0 : index
    %328 = vector.load %arg5[%c4_281, %c0_282, %c0_283] : memref<7x8x128xf32, #tpu.memory_space<vmem>>, vector<1x8x128xf32>
    %329 = vector.shape_cast %328 : vector<1x8x128xf32> to vector<8x128xf32>
    %330 = vector.shape_cast %320 : vector<8x128xf32> to vector<1x8x128xf32>
    tpu.vector_store %arg5[%c4_281, %c0_282, %c0_283], %330 {strides = array<i32>} : memref<7x8x128xf32, #tpu.memory_space<vmem>>, vector<1x8x128xf32>,
    %331 = vector.broadcast %321 : vector<1x8x128xf32> to vector<4x8x128xf32>
    %332 = arith.mulf %331, %322 : vector<4x8x128xf32>
    %333 = arith.addf %323, %332 : vector<4x8x128xf32>
    %c1_284 = arith.constant 1 : index
    %c0_285 = arith.constant 0 : index
    %c0_286 = arith.constant 0 : index
    %334 = vector.load %arg6[%c1_284, %c0_285, %c0_286] : memref<7x8x128xf32, #tpu.memory_space<vmem>>, vector<4x8x128xf32>
    tpu.vector_store %arg6[%c1_284, %c0_285, %c0_286], %333 {strides = array<i32>} : memref<7x8x128xf32, #tpu.memory_space<vmem>>, vector<4x8x128xf32>,
    %c0_287 = arith.constant 0 : index
    %c0_288 = arith.constant 0 : index
    %c0_289 = arith.constant 0 : index
    %335 = vector.load %arg6[%c0_287, %c0_288, %c0_289] : memref<7x8x128xf32, #tpu.memory_space<vmem>>, vector<1x8x128xf32>
    %336 = vector.shape_cast %335 : vector<1x8x128xf32> to vector<8x128xf32>
    %337 = vector.shape_cast %320 : vector<8x128xf32> to vector<1x8x128xf32>
    tpu.vector_store %arg6[%c0_287, %c0_288, %c0_289], %337 {strides = array<i32>} : memref<7x8x128xf32, #tpu.memory_space<vmem>>, vector<1x8x128xf32>,
    %c5_290 = arith.constant 5 : index
    %c0_291 = arith.constant 0 : index
    %c0_292 = arith.constant 0 : index
    %338 = vector.load %arg4[%c5_290, %c0_291, %c0_292] : memref<7x8x128xf32, #tpu.memory_space<vmem>>, vector<1x8x128xf32>
    %339 = vector.shape_cast %338 : vector<1x8x128xf32> to vector<8x128xf32>
    %340 = vector.shape_cast %339 : vector<8x128xf32> to vector<1x8x128xf32>
    %c0_293 = arith.constant 0 : index
    %c0_294 = arith.constant 0 : index
    %c0_295 = arith.constant 0 : index
    %341 = vector.load %arg5[%c0_293, %c0_294, %c0_295] : memref<7x8x128xf32, #tpu.memory_space<vmem>>, vector<5x8x128xf32>
    %c0_296 = arith.constant 0 : index
    %c0_297 = arith.constant 0 : index
    %c0_298 = arith.constant 0 : index
    %342 = vector.load %arg6[%c0_296, %c0_297, %c0_298] : memref<7x8x128xf32, #tpu.memory_space<vmem>>, vector<5x8x128xf32>
    %343 = vector.broadcast %340 : vector<1x8x128xf32> to vector<5x8x128xf32>
    %344 = arith.mulf %343, %342 : vector<5x8x128xf32>
    %345 = arith.addf %341, %344 : vector<5x8x128xf32>
    %c0_299 = arith.constant 0 : index
    %c0_300 = arith.constant 0 : index
    %c0_301 = arith.constant 0 : index
    %346 = vector.load %arg5[%c0_299, %c0_300, %c0_301] : memref<7x8x128xf32, #tpu.memory_space<vmem>>, vector<5x8x128xf32>
    tpu.vector_store %arg5[%c0_299, %c0_300, %c0_301], %345 {strides = array<i32>} : memref<7x8x128xf32, #tpu.memory_space<vmem>>, vector<5x8x128xf32>,
    %c5_302 = arith.constant 5 : index
    %c0_303 = arith.constant 0 : index
    %c0_304 = arith.constant 0 : index
    %347 = vector.load %arg5[%c5_302, %c0_303, %c0_304] : memref<7x8x128xf32, #tpu.memory_space<vmem>>, vector<1x8x128xf32>
    %348 = vector.shape_cast %347 : vector<1x8x128xf32> to vector<8x128xf32>
    %349 = vector.shape_cast %339 : vector<8x128xf32> to vector<1x8x128xf32>
    tpu.vector_store %arg5[%c5_302, %c0_303, %c0_304], %349 {strides = array<i32>} : memref<7x8x128xf32, #tpu.memory_space<vmem>>, vector<1x8x128xf32>,
    %350 = vector.broadcast %340 : vector<1x8x128xf32> to vector<5x8x128xf32>
    %351 = arith.mulf %350, %341 : vector<5x8x128xf32>
    %352 = arith.addf %342, %351 : vector<5x8x128xf32>
    %c1_305 = arith.constant 1 : index
    %c0_306 = arith.constant 0 : index
    %c0_307 = arith.constant 0 : index
    %353 = vector.load %arg6[%c1_305, %c0_306, %c0_307] : memref<7x8x128xf32, #tpu.memory_space<vmem>>, vector<5x8x128xf32>
    tpu.vector_store %arg6[%c1_305, %c0_306, %c0_307], %352 {strides = array<i32>} : memref<7x8x128xf32, #tpu.memory_space<vmem>>, vector<5x8x128xf32>,
    %c0_308 = arith.constant 0 : index
    %c0_309 = arith.constant 0 : index
    %c0_310 = arith.constant 0 : index
    %354 = vector.load %arg6[%c0_308, %c0_309, %c0_310] : memref<7x8x128xf32, #tpu.memory_space<vmem>>, vector<1x8x128xf32>
    %355 = vector.shape_cast %354 : vector<1x8x128xf32> to vector<8x128xf32>
    %356 = vector.shape_cast %339 : vector<8x128xf32> to vector<1x8x128xf32>
    tpu.vector_store %arg6[%c0_308, %c0_309, %c0_310], %356 {strides = array<i32>} : memref<7x8x128xf32, #tpu.memory_space<vmem>>, vector<1x8x128xf32>,
    %c6_311 = arith.constant 6 : index
    %c0_312 = arith.constant 0 : index
    %c0_313 = arith.constant 0 : index
    %357 = vector.load %arg4[%c6_311, %c0_312, %c0_313] : memref<7x8x128xf32, #tpu.memory_space<vmem>>, vector<1x8x128xf32>
    %358 = vector.shape_cast %357 : vector<1x8x128xf32> to vector<8x128xf32>
    %359 = vector.shape_cast %358 : vector<8x128xf32> to vector<1x8x128xf32>
    %c0_314 = arith.constant 0 : index
    %c0_315 = arith.constant 0 : index
    %c0_316 = arith.constant 0 : index
    %360 = vector.load %arg5[%c0_314, %c0_315, %c0_316] : memref<7x8x128xf32, #tpu.memory_space<vmem>>, vector<6x8x128xf32>
    %c0_317 = arith.constant 0 : index
    %c0_318 = arith.constant 0 : index
    %c0_319 = arith.constant 0 : index
    %361 = vector.load %arg6[%c0_317, %c0_318, %c0_319] : memref<7x8x128xf32, #tpu.memory_space<vmem>>, vector<6x8x128xf32>
    %362 = vector.broadcast %359 : vector<1x8x128xf32> to vector<6x8x128xf32>
    %363 = arith.mulf %362, %361 : vector<6x8x128xf32>
    %364 = arith.addf %360, %363 : vector<6x8x128xf32>
    %c0_320 = arith.constant 0 : index
    %c0_321 = arith.constant 0 : index
    %c0_322 = arith.constant 0 : index
    %365 = vector.load %arg5[%c0_320, %c0_321, %c0_322] : memref<7x8x128xf32, #tpu.memory_space<vmem>>, vector<6x8x128xf32>
    tpu.vector_store %arg5[%c0_320, %c0_321, %c0_322], %364 {strides = array<i32>} : memref<7x8x128xf32, #tpu.memory_space<vmem>>, vector<6x8x128xf32>,
    %c6_323 = arith.constant 6 : index
    %c0_324 = arith.constant 0 : index
    %c0_325 = arith.constant 0 : index
    %366 = vector.load %arg5[%c6_323, %c0_324, %c0_325] : memref<7x8x128xf32, #tpu.memory_space<vmem>>, vector<1x8x128xf32>
    %367 = vector.shape_cast %366 : vector<1x8x128xf32> to vector<8x128xf32>
    %368 = vector.shape_cast %358 : vector<8x128xf32> to vector<1x8x128xf32>
    tpu.vector_store %arg5[%c6_323, %c0_324, %c0_325], %368 {strides = array<i32>} : memref<7x8x128xf32, #tpu.memory_space<vmem>>, vector<1x8x128xf32>,
    %369 = vector.broadcast %359 : vector<1x8x128xf32> to vector<6x8x128xf32>
    %370 = arith.mulf %369, %360 : vector<6x8x128xf32>
    %371 = arith.addf %361, %370 : vector<6x8x128xf32>
    %c1_326 = arith.constant 1 : index
    %c0_327 = arith.constant 0 : index
    %c0_328 = arith.constant 0 : index
    %372 = vector.load %arg6[%c1_326, %c0_327, %c0_328] : memref<7x8x128xf32, #tpu.memory_space<vmem>>, vector<6x8x128xf32>
    tpu.vector_store %arg6[%c1_326, %c0_327, %c0_328], %371 {strides = array<i32>} : memref<7x8x128xf32, #tpu.memory_space<vmem>>, vector<6x8x128xf32>,
    %c0_329 = arith.constant 0 : index
    %c0_330 = arith.constant 0 : index
    %c0_331 = arith.constant 0 : index
    %373 = vector.load %arg6[%c0_329, %c0_330, %c0_331] : memref<7x8x128xf32, #tpu.memory_space<vmem>>, vector<1x8x128xf32>
    %374 = vector.shape_cast %373 : vector<1x8x128xf32> to vector<8x128xf32>
    %375 = vector.shape_cast %358 : vector<8x128xf32> to vector<1x8x128xf32>
    tpu.vector_store %arg6[%c0_329, %c0_330, %c0_331], %375 {strides = array<i32>} : memref<7x8x128xf32, #tpu.memory_space<vmem>>, vector<1x8x128xf32>,
    %c0_332 = arith.constant 0 : index
    %c0_333 = arith.constant 0 : index
    %c0_334 = arith.constant 0 : index
    %376 = vector.load %arg5[%c0_332, %c0_333, %c0_334] : memref<7x8x128xf32, #tpu.memory_space<vmem>>, vector<1x8x128xf32>
    %377 = vector.shape_cast %376 : vector<1x8x128xf32> to vector<8x128xf32>
    %c1_335 = arith.constant 1 : index
    %c0_336 = arith.constant 0 : index
    %c0_337 = arith.constant 0 : index
    %378 = vector.load %arg2[%c1_335, %c0_336, %c0_337] : memref<8x8x128xf32, #tpu.memory_space<vmem>>, vector<1x8x128xf32>
    %379 = vector.shape_cast %378 : vector<1x8x128xf32> to vector<8x128xf32>
    %380 = vector.shape_cast %377 : vector<8x128xf32> to vector<1x8x128xf32>
    tpu.vector_store %arg2[%c1_335, %c0_336, %c0_337], %380 {strides = array<i32>} : memref<8x8x128xf32, #tpu.memory_space<vmem>>, vector<1x8x128xf32>,
    %c1_338 = arith.constant 1 : index
    %c0_339 = arith.constant 0 : index
    %c0_340 = arith.constant 0 : index
    %381 = vector.load %arg5[%c1_338, %c0_339, %c0_340] : memref<7x8x128xf32, #tpu.memory_space<vmem>>, vector<1x8x128xf32>
    %382 = vector.shape_cast %381 : vector<1x8x128xf32> to vector<8x128xf32>
    %c2_341 = arith.constant 2 : index
    %c0_342 = arith.constant 0 : index
    %c0_343 = arith.constant 0 : index
    %383 = vector.load %arg2[%c2_341, %c0_342, %c0_343] : memref<8x8x128xf32, #tpu.memory_space<vmem>>, vector<1x8x128xf32>
    %384 = vector.shape_cast %383 : vector<1x8x128xf32> to vector<8x128xf32>
    %385 = vector.shape_cast %382 : vector<8x128xf32> to vector<1x8x128xf32>
    tpu.vector_store %arg2[%c2_341, %c0_342, %c0_343], %385 {strides = array<i32>} : memref<8x8x128xf32, #tpu.memory_space<vmem>>, vector<1x8x128xf32>,
    %c2_344 = arith.constant 2 : index
    %c0_345 = arith.constant 0 : index
    %c0_346 = arith.constant 0 : index
    %386 = vector.load %arg5[%c2_344, %c0_345, %c0_346] : memref<7x8x128xf32, #tpu.memory_space<vmem>>, vector<1x8x128xf32>
    %387 = vector.shape_cast %386 : vector<1x8x128xf32> to vector<8x128xf32>
    %c3_347 = arith.constant 3 : index
    %c0_348 = arith.constant 0 : index
    %c0_349 = arith.constant 0 : index
    %388 = vector.load %arg2[%c3_347, %c0_348, %c0_349] : memref<8x8x128xf32, #tpu.memory_space<vmem>>, vector<1x8x128xf32>
    %389 = vector.shape_cast %388 : vector<1x8x128xf32> to vector<8x128xf32>
    %390 = vector.shape_cast %387 : vector<8x128xf32> to vector<1x8x128xf32>
    tpu.vector_store %arg2[%c3_347, %c0_348, %c0_349], %390 {strides = array<i32>} : memref<8x8x128xf32, #tpu.memory_space<vmem>>, vector<1x8x128xf32>,
    %c3_350 = arith.constant 3 : index
    %c0_351 = arith.constant 0 : index
    %c0_352 = arith.constant 0 : index
    %391 = vector.load %arg5[%c3_350, %c0_351, %c0_352] : memref<7x8x128xf32, #tpu.memory_space<vmem>>, vector<1x8x128xf32>
    %392 = vector.shape_cast %391 : vector<1x8x128xf32> to vector<8x128xf32>
    %c4_353 = arith.constant 4 : index
    %c0_354 = arith.constant 0 : index
    %c0_355 = arith.constant 0 : index
    %393 = vector.load %arg2[%c4_353, %c0_354, %c0_355] : memref<8x8x128xf32, #tpu.memory_space<vmem>>, vector<1x8x128xf32>
    %394 = vector.shape_cast %393 : vector<1x8x128xf32> to vector<8x128xf32>
    %395 = vector.shape_cast %392 : vector<8x128xf32> to vector<1x8x128xf32>
    tpu.vector_store %arg2[%c4_353, %c0_354, %c0_355], %395 {strides = array<i32>} : memref<8x8x128xf32, #tpu.memory_space<vmem>>, vector<1x8x128xf32>,
    %c4_356 = arith.constant 4 : index
    %c0_357 = arith.constant 0 : index
    %c0_358 = arith.constant 0 : index
    %396 = vector.load %arg5[%c4_356, %c0_357, %c0_358] : memref<7x8x128xf32, #tpu.memory_space<vmem>>, vector<1x8x128xf32>
    %397 = vector.shape_cast %396 : vector<1x8x128xf32> to vector<8x128xf32>
    %c5_359 = arith.constant 5 : index
    %c0_360 = arith.constant 0 : index
    %c0_361 = arith.constant 0 : index
    %398 = vector.load %arg2[%c5_359, %c0_360, %c0_361] : memref<8x8x128xf32, #tpu.memory_space<vmem>>, vector<1x8x128xf32>
    %399 = vector.shape_cast %398 : vector<1x8x128xf32> to vector<8x128xf32>
    %400 = vector.shape_cast %397 : vector<8x128xf32> to vector<1x8x128xf32>
    tpu.vector_store %arg2[%c5_359, %c0_360, %c0_361], %400 {strides = array<i32>} : memref<8x8x128xf32, #tpu.memory_space<vmem>>, vector<1x8x128xf32>,
    %c5_362 = arith.constant 5 : index
    %c0_363 = arith.constant 0 : index
    %c0_364 = arith.constant 0 : index
    %401 = vector.load %arg5[%c5_362, %c0_363, %c0_364] : memref<7x8x128xf32, #tpu.memory_space<vmem>>, vector<1x8x128xf32>
    %402 = vector.shape_cast %401 : vector<1x8x128xf32> to vector<8x128xf32>
    %c6_365 = arith.constant 6 : index
    %c0_366 = arith.constant 0 : index
    %c0_367 = arith.constant 0 : index
    %403 = vector.load %arg2[%c6_365, %c0_366, %c0_367] : memref<8x8x128xf32, #tpu.memory_space<vmem>>, vector<1x8x128xf32>
    %404 = vector.shape_cast %403 : vector<1x8x128xf32> to vector<8x128xf32>
    %405 = vector.shape_cast %402 : vector<8x128xf32> to vector<1x8x128xf32>
    tpu.vector_store %arg2[%c6_365, %c0_366, %c0_367], %405 {strides = array<i32>} : memref<8x8x128xf32, #tpu.memory_space<vmem>>, vector<1x8x128xf32>,
    %c6_368 = arith.constant 6 : index
    %c0_369 = arith.constant 0 : index
    %c0_370 = arith.constant 0 : index
    %406 = vector.load %arg5[%c6_368, %c0_369, %c0_370] : memref<7x8x128xf32, #tpu.memory_space<vmem>>, vector<1x8x128xf32>
    %407 = vector.shape_cast %406 : vector<1x8x128xf32> to vector<8x128xf32>
    %c7_371 = arith.constant 7 : index
    %c0_372 = arith.constant 0 : index
    %c0_373 = arith.constant 0 : index
    %408 = vector.load %arg2[%c7_371, %c0_372, %c0_373] : memref<8x8x128xf32, #tpu.memory_space<vmem>>, vector<1x8x128xf32>
    %409 = vector.shape_cast %408 : vector<1x8x128xf32> to vector<8x128xf32>
    %410 = vector.shape_cast %407 : vector<8x128xf32> to vector<1x8x128xf32>
    tpu.vector_store %arg2[%c7_371, %c0_372, %c0_373], %410 {strides = array<i32>} : memref<8x8x128xf32, #tpu.memory_space<vmem>>, vector<1x8x128xf32>,
    return
  }
  func.func @transform_0(%arg0: i32) -> (i32, i32, i32) {
    %c0_i32 = arith.constant 0 : i32
    %c0_i32_0 = arith.constant 0 : i32
    %c0_i32_1 = arith.constant 0 : i32
    return %c0_i32, %arg0, %c0_i32_0 : i32, i32, i32
  }
  func.func @transform_1(%arg0: i32) -> (i32, i32, i32) {
    %c0_i32 = arith.constant 0 : i32
    %c0_i32_0 = arith.constant 0 : i32
    %c0_i32_1 = arith.constant 0 : i32
    return %c0_i32, %arg0, %c0_i32_0 : i32, i32, i32
  }
  func.func @transform_2(%arg0: i32) -> (i32, i32) {
    %c0_i32 = arith.constant 0 : i32
    %c0_i32_0 = arith.constant 0 : i32
    return %arg0, %c0_i32 : i32, i32
  }
}

</mosaic_0001>

<bundles_post_ra>
// kernel: tpu_custom_call.1
= control target key start
LH: loop header
LB: loop body
LE: loop exit
PB: predicated region body
PF: predicated region fallthrough
CT: control target
= control target key end

     0   :  { %8 = vsyncpa [#allocation6], 0  ;;  %s869_s0 = inlined_call_operand.hbm [shape: f32[8,8,128], index: 0, kind: input, shape index: {}]   ;;  %s870_s1 = inlined_call_operand.hbm [shape: f32[8,8,128], index: 1, kind: output, shape index: {0}]   ;;  %s871_s2 = inlined_call_operand.hbm [shape: f32[8,128], index: 2, kind: output, shape index: {1}]  }
   0x1   :  { %9 = vsyncpa [#allocation7], 0 }
   0x2   :  { %10 = vsyncpa [#allocation10], 0  ;;  %s15_s11 = sshll.u32 %s869_s0, 4  ;;  %s772_s12 = smov [#allocation5]   ;;  %s16_s11 = int_to_ptr.hbm [resolvable:$true] %s15_s11 }
   0x3   :  { %s17_s13 = sshll.u32 %s772_s12, 4  ;;  %s773_s14 = smov 128   ;;  %s18_s13 = int_to_ptr.vmem [resolvable:$true] %s17_s13 }
   0x4   :  { %s774_s15 = smov 8  }
   0x5   :  { %23 = dma.hbm_to_vmem [thread:$0]  %s16_s11, 1024, %s18_s13, [#allocation6], %s773_s14, %s773_s14, %s774_s15  }
   0x6   :  { %766 = dma.done.wait [#allocation6], 1024  }
   0x7   :  { %767 = vsyncadd [#allocation6], 4294966272  ;;  %v28_v0 = vld [vmem:[#allocation5] sm:$0xff]  ;;  %v798_v1 = vld [vmem:[#allocation5 + $0x38] sm:$0xff]  ;;  %s775_s0 = smov [#allocation9]   ;;  %s655_s19 = sshll.u32 %s871_s2, 4  ;;  %s656_s19 = int_to_ptr.hbm [resolvable:$true] %s655_s19 }
   0x8   :  { %29 = vst [vmem:[#allocation8] sm:$0xff] %v28_v0  ;;  %v77_v2 = vmul.f32 %v798_v1, %v798_v1  ;;  %v31_v5 = vld [vmem:[#allocation5 + $0x8] sm:$0xff]  ;;  %v60_v11 = vld [vmem:[#allocation5 + $0x30] sm:$0xff]  ;;  %v42_v38 = vld [vmem:[#allocation5 + $0x18] sm:$0xff]  ;;  %v71_v56 = vand.u32 2147483647, %v798_v1 }
   0x9   :  { %v110_v10 = vmul.f32 %v798_v1, %v31_v5  ;;  %v105_v20 = vmul.f32 %v798_v1, %v60_v11  ;;  %v36_v22 = vld [vmem:[#allocation5 + $0x10] sm:$0xff]  ;;  %v54_v25 = vld [vmem:[#allocation5 + $0x28] sm:$0xff]  ;;  %v108_v42 = vmul.f32 %v798_v1, %v42_v38  ;;  %v48_v45 = vld [vmem:[#allocation5 + $0x20] sm:$0xff]  ;;  %s653_s16 = sshll.u32 %s775_s0, 4  ;;  %s776_s2 = smov [#allocation8]   ;;  %s654_s16 = int_to_ptr.vmem [resolvable:$true] %s653_s16 }
   0xa   :  { %v78_v3 = vsub.f32 1.0, %v77_v2  ;;  %v109_v23 = vmul.f32 %v798_v1, %v36_v22  ;;  %v106_v36 = vmul.f32 %v798_v1, %v54_v25  ;;  %v107_v55 = vmul.f32 %v798_v1, %v48_v45  ;;  %s639_s20 = sshll.u32 %s776_s2, 4  ;;  %s641_s23 = sshll.u32 %s870_s1, 4  ;;  %s640_s20 = int_to_ptr.vmem [resolvable:$true] %s639_s20  ;;  %s642_s23 = int_to_ptr.hbm [resolvable:$true] %s641_s23 }
   0xb   :  { %v116_v15 = vsub.f32 %v60_v11, %v110_v10  ;;  %v111_v24 = vsub.f32 %v31_v5, %v105_v20  ;;  %v114_v47 = vsub.f32 %v48_v45, %v108_v42  ;;  %v72_v61 = vmax.f32 %v71_v56, 0.0 }
   0xc   :  { %682 = vrcp.f32 %v78_v3  ;;  %v90_v7 = vand.u32 2147483648, %v78_v3  ;;  %vm84_vm0 = vweird.f32 %v78_v3  ;;  %v88_v9 = vand.u32 2147483647, %v78_v3 }
   0xd   :  { %v115_v27 = vsub.f32 %v54_v25, %v109_v23  ;;  %v112_v43 = vsub.f32 %v36_v22, %v106_v36  ;;  %v113_v60 = vsub.f32 %v42_v38, %v107_v55 }
   0xe   :  { %v91_v13 = vor.u32 1.1754944e-38, %v90_v7  ;;  %vm89_vm3 = vcmp.eq.f32.partialorder %v88_v9, 8.507059e+37 }
  0x12   :  { %v683_v4 = vpop.eup %682 }
  0x13   :  { %v80_v6 = vmul.f32 %v683_v4, %v78_v3  ;;  %vm85_vm1 = vweird.f32 %v683_v4 }
  0x14   :  { %vm86_vm2 = vmor %vm84_vm0, %vm85_vm1 }
  0x15   :  { %v81_v8 = vsub.f32 1.0, %v80_v6 }
  0x17   :  { %v82_v12 = vmul.f32 %v683_v4, %v81_v8 }
  0x19   :  { %v83_v14 = vadd.f32 %v683_v4, %v82_v12 }
  0x1b   :  { %v87_v16 = vsel %vm86_vm2, %v683_v4, %v83_v14 }
  0x1c   :  { %v92_v17 = vsel %vm89_vm3, %v91_v13, %v87_v16 }
  0x1d   :  { %v803_v18 = vmul.f32 %v116_v15, %v92_v17  ;;  %v117_v28 = vmul.f32 %v111_v24, %v92_v17  ;;  %v121_v33 = vmul.f32 %v115_v27, %v92_v17  ;;  %v118_v48 = vmul.f32 %v112_v43, %v92_v17 }
  0x1e   :  { %v120_v52 = vmul.f32 %v114_v47, %v92_v17  ;;  %v119_v6 = vmul.f32 %v113_v60, %v92_v17 }
  0x1f   :  { %v160_v19 = vmul.f32 %v803_v18, %v803_v18  ;;  %v190_v34 = vmul.f32 %v803_v18, %v117_v28  ;;  %v186_v49 = vmul.f32 %v803_v18, %v121_v33  ;;  %v189_v53 = vmul.f32 %v803_v18, %v118_v48 }
  0x20   :  { %v154_v63 = vand.u32 2147483647, %v803_v18  ;;  %v187_v7 = vmul.f32 %v803_v18, %v120_v52  ;;  %v188_v14 = vmul.f32 %v803_v18, %v119_v6 }
  0x21   :  { %v161_v21 = vsub.f32 1.0, %v160_v19  ;;  %v195_v40 = vsub.f32 %v121_v33, %v190_v34  ;;  %v191_v54 = vsub.f32 %v117_v28, %v186_v49  ;;  %v194_v57 = vsub.f32 %v120_v52, %v189_v53 }
  0x22   :  { %v155_v9 = vmax.f32 %v72_v61, %v154_v63  ;;  %v192_v15 = vsub.f32 %v118_v48, %v187_v7  ;;  %v193_v17 = vsub.f32 %v119_v6, %v188_v14  ;;  %v839_v6 = vclamps-f32 %v798_v1, 1.0 }
  0x23   :  { %684 = vrcp.f32 %v161_v21  ;;  %v173_v30 = vand.u32 2147483648, %v161_v21  ;;  %vm167_vm4 = vweird.f32 %v161_v21  ;;  %v171_v32 = vand.u32 2147483647, %v161_v21 }
  0x24   :  { %634 = vst [vmem:[#allocation8 + $0x38] sm:$0xff] %v839_v6 }
  0x25   :  { %v174_v37 = vor.u32 1.1754944e-38, %v173_v30  ;;  %vm172_vm7 = vcmp.eq.f32.partialorder %v171_v32, 8.507059e+37 }
  0x29   :  { %v685_v26 = vpop.eup %684 }
  0x2a   :  { %v163_v29 = vmul.f32 %v685_v26, %v161_v21  ;;  %vm168_vm5 = vweird.f32 %v685_v26 }
  0x2b   :  { %vm169_vm6 = vmor %vm167_vm4, %vm168_vm5 }
  0x2c   :  { %v164_v31 = vsub.f32 1.0, %v163_v29 }
  0x2e   :  { %v165_v35 = vmul.f32 %v685_v26, %v164_v31 }
  0x30   :  { %v166_v39 = vadd.f32 %v685_v26, %v165_v35 }
  0x32   :  { %v170_v41 = vsel %vm169_vm6, %v685_v26, %v166_v39 }
  0x33   :  { %v175_v44 = vsel %vm172_vm7, %v174_v37, %v170_v41 }
  0x34   :  { %v812_v46 = vmul.f32 %v195_v40, %v175_v44  ;;  %v196_v58 = vmul.f32 %v191_v54, %v175_v44  ;;  %v199_v0 = vmul.f32 %v194_v57, %v175_v44  ;;  %v197_v22 = vmul.f32 %v192_v15, %v175_v44 }
  0x35   :  { %v198_v28 = vmul.f32 %v193_v17, %v175_v44 }
  0x36   :  { %v233_v50 = vmul.f32 %v812_v46, %v812_v46  ;;  %v260_v3 = vmul.f32 %v812_v46, %v196_v58  ;;  %v227_v11 = vand.u32 2147483647, %v812_v46  ;;  %v257_v23 = vmul.f32 %v812_v46, %v199_v0 }
  0x37   :  { %v259_v29 = vmul.f32 %v812_v46, %v197_v22  ;;  %v258_v40 = vmul.f32 %v812_v46, %v198_v28  ;;  %v842_v7 = vclamps-f32 %v812_v46, 1.0 }
  0x38   :  { %v234_v51 = vsub.f32 1.0, %v233_v50  ;;  %v264_v13 = vsub.f32 %v199_v0, %v260_v3  ;;  %v228_v20 = vmax.f32 %v155_v9, %v227_v11  ;;  %v261_v30 = vsub.f32 %v196_v58, %v257_v23 }
  0x39   :  { %v263_v31 = vsub.f32 %v198_v28, %v259_v29  ;;  %v262_v45 = vsub.f32 %v197_v22, %v258_v40 }
  0x3a   :  { %686 = vrcp.f32 %v234_v51  ;;  %v246_v2 = vand.u32 2147483648, %v234_v51  ;;  %vm240_vm8 = vweird.f32 %v234_v51  ;;  %v244_v5 = vand.u32 2147483647, %v234_v51 }
  0x3c   :  { %v247_v10 = vor.u32 1.1754944e-38, %v246_v2  ;;  %vm245_vm11 = vcmp.eq.f32.partialorder %v244_v5, 8.507059e+37 }
  0x40   :  { %v687_v59 = vpop.eup %686 }
  0x41   :  { %v236_v62 = vmul.f32 %v687_v59, %v234_v51  ;;  %vm241_vm9 = vweird.f32 %v687_v59 }
  0x42   :  { %vm242_vm10 = vmor %vm240_vm8, %vm241_vm9 }
  0x43   :  { %v237_v4 = vsub.f32 1.0, %v236_v62 }
  0x45   :  { %v238_v8 = vmul.f32 %v687_v59, %v237_v4 }
  0x47   :  { %v239_v12 = vadd.f32 %v687_v59, %v238_v8 }
  0x49   :  { %v243_v16 = vsel %vm242_vm10, %v687_v59, %v239_v12 }
  0x4a   :  { %v248_v19 = vsel %vm245_vm11, %v247_v10, %v243_v16 }
  0x4b   :  { %v825_v21 = vmul.f32 %v264_v13, %v248_v19  ;;  %v265_v32 = vmul.f32 %v261_v30, %v248_v19  ;;  %v267_v35 = vmul.f32 %v263_v31, %v248_v19  ;;  %v266_v50 = vmul.f32 %v262_v45, %v248_v19 }
  0x4d   :  { %v290_v24 = vand.u32 2147483647, %v825_v21  ;;  %v296_v25 = vmul.f32 %v825_v21, %v825_v21  ;;  %v320_v37 = vmul.f32 %v825_v21, %v265_v32  ;;  %v318_v51 = vmul.f32 %v825_v21, %v267_v35 }
  0x4e   :  { %v319_v54 = vmul.f32 %v825_v21, %v266_v50  ;;  %v673_v10 = vclamps-f32 %v825_v21, 1.0 }
  0x4f   :  { %v831_v26 = vmax.f32 %v228_v20, %v290_v24  ;;  %v297_v27 = vsub.f32 1.0, %v296_v25  ;;  %v323_v44 = vsub.f32 %v267_v35, %v320_v37  ;;  %v321_v55 = vsub.f32 %v265_v32, %v318_v51 }
  0x50   :  { %v322_v56 = vsub.f32 %v266_v50, %v319_v54  ;;  %v494_v12 = vmul.f32 %v673_v10, %v842_v7 }
  0x51   :  { %688 = vrcp.f32 %v297_v27  ;;  %v309_v36 = vand.u32 2147483648, %v297_v27  ;;  %vm303_vm12 = vweird.f32 %v297_v27  ;;  %v307_v39 = vand.u32 2147483647, %v297_v27 }
  0x53   :  { %v310_v42 = vor.u32 1.1754944e-38, %v309_v36  ;;  %vm308_vm15 = vcmp.eq.f32.partialorder %v307_v39, 8.507059e+37 }
  0x57   :  { %v689_v33 = vpop.eup %688 }
  0x58   :  { %v299_v34 = vmul.f32 %v689_v33, %v297_v27  ;;  %vm304_vm13 = vweird.f32 %v689_v33 }
  0x59   :  { %vm305_vm14 = vmor %vm303_vm12, %vm304_vm13 }
  0x5a   :  { %v300_v38 = vsub.f32 1.0, %v299_v34 }
  0x5c   :  { %v301_v41 = vmul.f32 %v689_v33, %v300_v38 }
  0x5e   :  { %v302_v43 = vadd.f32 %v689_v33, %v301_v41 }
  0x60   :  { %v306_v47 = vsel %vm305_vm14, %v689_v33, %v302_v43 }
  0x61   :  { %v311_v48 = vsel %vm308_vm15, %v310_v42, %v306_v47  ;;  %v671_v42 = vclamps-f32 %v803_v18, 1.0 }
  0x62   :  { %v326_v49 = vmul.f32 %v323_v44, %v311_v48  ;;  %v324_v57 = vmul.f32 %v321_v55, %v311_v48  ;;  %v325_v60 = vmul.f32 %v322_v56, %v311_v48 }
  0x63   :  { %v531_v48 = vmul.f32 %v842_v7, %v671_v42  ;;  %v576_v51 = vmul.f32 %v671_v42, %v839_v6 }
  0x64   :  { %v349_v52 = vmul.f32 %v326_v49, %v326_v49  ;;  %v370_v62 = vmul.f32 %v326_v49, %v324_v57  ;;  %v369_v13 = vmul.f32 %v326_v49, %v325_v60  ;;  %v343_v17 = vand.u32 2147483647, %v326_v49 }
  0x65   :  { %v674_v36 = vclamps-f32 %v326_v49, 1.0 }
  0x66   :  { %v350_v53 = vsub.f32 1.0, %v349_v52  ;;  %v372_v5 = vsub.f32 %v325_v60, %v370_v62  ;;  %v371_v16 = vsub.f32 %v324_v57, %v369_v13  ;;  %v344_v25 = vmax.f32 %v831_v26, %v343_v17 }
  0x67   :  { %v465_v43 = vmul.f32 %v674_v36, %v673_v10 }
  0x68   :  { %690 = vrcp.f32 %v350_v53  ;;  %v362_v61 = vand.u32 2147483648, %v350_v53  ;;  %vm356_vm0 = vweird.f32 %v350_v53  ;;  %v360_v0 = vand.u32 2147483647, %v350_v53 }
  0x6a   :  { %v363_v3 = vor.u32 1.1754944e-38, %v362_v61  ;;  %vm361_vm3 = vcmp.eq.f32.partialorder %v360_v0, 8.507059e+37 }
  0x6e   :  { %v691_v58 = vpop.eup %690 }
  0x6f   :  { %v352_v59 = vmul.f32 %v691_v58, %v350_v53  ;;  %vm357_vm1 = vweird.f32 %v691_v58 }
  0x70   :  { %vm358_vm2 = vmor %vm356_vm0, %vm357_vm1 }
  0x71   :  { %v353_v63 = vsub.f32 1.0, %v352_v59 }
  0x73   :  { %v354_v2 = vmul.f32 %v691_v58, %v353_v63 }
  0x75   :  { %v355_v4 = vadd.f32 %v691_v58, %v354_v2 }
  0x77   :  { %v359_v8 = vsel %vm358_vm2, %v691_v58, %v355_v4 }
  0x78   :  { %v364_v9 = vsel %vm361_vm3, %v363_v3, %v359_v8 }
  0x79   :  { %v374_v11 = vmul.f32 %v372_v5, %v364_v9  ;;  %v373_v19 = vmul.f32 %v371_v16, %v364_v9 }
  0x7b   :  { %v392_v14 = vmul.f32 %v374_v11, %v374_v11  ;;  %v410_v22 = vmul.f32 %v374_v11, %v373_v19  ;;  %v386_v28 = vand.u32 2147483647, %v374_v11  ;;  %v675_v34 = vclamps-f32 %v374_v11, 1.0 }
  0x7d   :  { %v393_v15 = vsub.f32 1.0, %v392_v14  ;;  %v411_v30 = vsub.f32 %v373_v19, %v410_v22  ;;  %v387_v33 = vmax.f32 %v344_v25, %v386_v28  ;;  %v444_v40 = vmul.f32 %v675_v34, %v674_v36 }
  0x7f   :  { %692 = vrcp.f32 %v393_v15  ;;  %v405_v46 = vand.u32 2147483648, %v393_v15  ;;  %vm399_vm4 = vweird.f32 %v393_v15  ;;  %v403_v21 = vand.u32 2147483647, %v393_v15 }
  0x81   :  { %v406_v27 = vor.u32 1.1754944e-38, %v405_v46  ;;  %vm404_vm7 = vcmp.eq.f32.partialorder %v403_v21, 8.507059e+37 }
  0x85   :  { %v693_v1 = vpop.eup %692 }
  0x86   :  { %v395_v20 = vmul.f32 %v693_v1, %v393_v15  ;;  %vm400_vm5 = vweird.f32 %v693_v1 }
  0x87   :  { %vm401_vm6 = vmor %vm399_vm4, %vm400_vm5 }
  0x88   :  { %v396_v23 = vsub.f32 1.0, %v395_v20 }
  0x8a   :  { %v397_v24 = vmul.f32 %v693_v1, %v396_v23 }
  0x8c   :  { %v398_v29 = vadd.f32 %v693_v1, %v397_v24 }
  0x8e   :  { %v402_v31 = vsel %vm401_vm6, %v693_v1, %v398_v29 }
  0x8f   :  { %v407_v32 = vsel %vm404_vm7, %v406_v27, %v402_v31 }
  0x90   :  { %v412_v35 = vmul.f32 %v411_v30, %v407_v32 }
  0x92   :  { %v419_v37 = vand.u32 2147483647, %v412_v35  ;;  %v676_v26 = vclamps-f32 %v412_v35, 1.0 }
  0x94   :  { %v420_v38 = vmax.f32 %v387_v33, %v419_v37  ;;  %v431_v39 = vmul.f32 %v676_v26, %v675_v34 }
  0x96   :  { %424 = vst [vmem:[#allocation9] sm:$0xff] %v420_v38  ;;  %v432_v41 = vadd.f32 %v676_v26, %v431_v39 }
  0x97   :  { %658 = dma.vmem_to_hbm [thread:$0]  %s654_s16, 128, %s656_s19, [#allocation10]  }
  0x98   :  { %v446_v44 = vadd.f32 %v444_v40, %v432_v41  ;;  %v445_v45 = vmul.f32 %v674_v36, %v432_v41 }
  0x9a   :  { %v468_v47 = vadd.f32 %v465_v43, %v446_v44  ;;  %v447_v49 = vadd.f32 %v675_v34, %v445_v45  ;;  %v467_v50 = vmul.f32 %v673_v10, %v446_v44 }
  0x9c   :  { %v498_v52 = vadd.f32 %v494_v12, %v468_v47  ;;  %v466_v53 = vmul.f32 %v673_v10, %v447_v49  ;;  %v470_v54 = vadd.f32 %v674_v36, %v467_v50  ;;  %v497_v55 = vmul.f32 %v842_v7, %v468_v47 }
  0x9e   :  { %v536_v56 = vadd.f32 %v531_v48, %v498_v52  ;;  %v469_v57 = vadd.f32 %v466_v53, %v447_v49  ;;  %v495_v18 = vmul.f32 %v842_v7, %v470_v54  ;;  %v501_v58 = vadd.f32 %v673_v10, %v497_v55 }
  0x9f   :  { %v535_v59 = vmul.f32 %v671_v42, %v498_v52 }
  0xa0   :  { %v582_v60 = vadd.f32 %v576_v51, %v536_v56  ;;  %v499_v61 = vadd.f32 %v495_v18, %v469_v57  ;;  %v532_v62 = vmul.f32 %v671_v42, %v501_v58  ;;  %v496_v63 = vmul.f32 %v842_v7, %v469_v57 }
  0xa1   :  { %v540_v0 = vadd.f32 %v842_v7, %v535_v59  ;;  %v581_v2 = vmul.f32 %v839_v6, %v536_v56 }
  0xa2   :  { %616 = vst [vmem:[#allocation8 + $0x8] sm:$0xff] %v582_v60  ;;  %v537_v3 = vadd.f32 %v532_v62, %v499_v61  ;;  %v500_v4 = vadd.f32 %v496_v63, %v470_v54  ;;  %v534_v5 = vmul.f32 %v671_v42, %v499_v61 }
  0xa3   :  { %v577_v8 = vmul.f32 %v839_v6, %v540_v0  ;;  %v587_v9 = vadd.f32 %v671_v42, %v581_v2 }
  0xa4   :  { %v533_v11 = vmul.f32 %v671_v42, %v500_v4  ;;  %v539_v12 = vadd.f32 %v534_v5, %v501_v58  ;;  %v580_v10 = vmul.f32 %v839_v6, %v537_v3 }
  0xa5   :  { %v583_v13 = vadd.f32 %v577_v8, %v537_v3  ;;  %631 = vst [vmem:[#allocation8 + $0x30] sm:$0xff] %v587_v9 }
  0xa6   :  { %v538_v14 = vadd.f32 %v533_v11, %v500_v4  ;;  %v578_v15 = vmul.f32 %v839_v6, %v539_v12  ;;  %v586_v16 = vadd.f32 %v580_v10, %v540_v0 }
  0xa7   :  { %619 = vst [vmem:[#allocation8 + $0x10] sm:$0xff] %v583_v13 }
  0xa8   :  { %v584_v7 = vadd.f32 %v578_v15, %v538_v14  ;;  %v579_v19 = vmul.f32 %v839_v6, %v538_v14  ;;  %628 = vst [vmem:[#allocation8 + $0x28] sm:$0xff] %v586_v16 }
  0xaa   :  { %622 = vst [vmem:[#allocation8 + $0x18] sm:$0xff] %v584_v7  ;;  %v585_v1 = vadd.f32 %v579_v19, %v539_v12 }
  0xac   :  { %625 = vst [vmem:[#allocation8 + $0x20] sm:$0xff] %v585_v1 }
  0xad   :  { %647 = dma.vmem_to_hbm [thread:$0]  %s640_s20, 1024, %s642_s23, [#allocation7], %s773_s14, %s773_s14, %s774_s15  }
  0xae   :  { %768 = dma.done.wait [#allocation7], 1024  }
  0xaf   :  { %769 = vsyncadd [#allocation7], 4294966272 }
  0xb0   :  { %770 = dma.done.wait [#allocation10], 128  }
  0xb1   :  { %771 = vsyncadd [#allocation10], 4294967168 }
  0xb2   :  { %667 = vsyncpa [#allocation6], 1 }
  0xb3   :  { %668 = vsyncpa [#allocation7], 1 }
  0xb4   :  { %669 = vsyncpa [#allocation10], 1 }

</bundles_post_ra>
